<compile_context>
chip_gen: v7x
topology: tpu7x:2x2x1
jax: 0.10.0
libtpu: 0.0.40
codegen_flags: <defaults>
</compile_context>

<pallas_src>
import functools

import jax
import jax.numpy as jnp
from jax import lax
from jax.experimental import pallas as pl
from jax.experimental.pallas import tpu as pltpu

EPS = 1e-5
LANE = 128


def _conv3x3_kernel(preact, tile_h, H, W, Cp, *refs):
    """3x3 stride-1 conv over one (tile_h, W) row tile of one image.

    src is the full spatially-padded image (1, H+2, W+2, Cp).  If `preact`, a folded
    BN scale/shift + ReLU of the *previous* conv is applied to each window before the
    conv, with the SAME-padding border masked back to exactly zero.  Also emits
    per-tile partial (sum, sum_sq) for the following BatchNorm.
    """
    if preact:
        src_ref, w_ref, scale_ref, shift_ref, out_ref, stats_ref, col_ref = refs
    else:
        src_ref, w_ref, out_ref, stats_ref, col_ref = refs
        scale_ref = shift_ref = None

    t = pl.program_id(1)
    row0 = t * tile_h            # top of this tile's halo window (padded coordinates)

    if preact:
        scale = scale_ref[...].reshape(1, 1, 1, Cp)
        shift = shift_ref[...].reshape(1, 1, 1, Cp)

    # Build im2col: column block `tap` holds x_pad[h_out+kh, w_out+kw, :].
    for kh in range(3):
        for kw in range(3):
            win = src_ref[:, pl.ds(row0 + kh, tile_h), pl.ds(kw, W), :]   # (1,tile_h,W,Cp) f32
            if preact:
                a = jnp.maximum(win * scale + shift, 0.0)
                # keep conv2's zero SAME-padding border exactly zero after BN+ReLU
                r = row0 + kh + lax.broadcasted_iota(jnp.int32, (1, tile_h, W, Cp), 1)
                c = kw + lax.broadcasted_iota(jnp.int32, (1, tile_h, W, Cp), 2)
                inside = (r >= 1) & (r <= H) & (c >= 1) & (c <= W)
                a = jnp.where(inside, a, 0.0)
            else:
                a = win
            tap = 3 * kh + kw
            col_ref[:, tap * Cp:(tap + 1) * Cp] = (
                a.reshape(tile_h * W, Cp).astype(jnp.bfloat16))

    # Single deep-K MXU matmul: (tile_h*W, 9*Cp) @ (9*Cp, Cp), f32 accumulation.
    acc = jnp.dot(col_ref[...], w_ref[...], preferred_element_type=jnp.float32)

    out_ref[...] = acc.reshape(1, tile_h, W, Cp)
    s = jnp.sum(acc, axis=0, keepdims=True)                 # (1, Cp)
    ss = jnp.sum(acc * acc, axis=0, keepdims=True)          # (1, Cp)
    stats_ref[:, :, 0:1, :] = s.reshape(1, 1, 1, Cp)
    stats_ref[:, :, 1:2, :] = ss.reshape(1, 1, 1, Cp)


def _finalize_kernel(raw2_ref, res_ref, scale_ref, shift_ref, out_ref):
    """out = relu(bn2(conv2_raw) + residual), BN folded to per-channel scale/shift."""
    scale = scale_ref[...].reshape(1, 1, 1, -1)
    shift = shift_ref[...].reshape(1, 1, 1, -1)
    y = raw2_ref[...] * scale + shift + res_ref[...]
    out_ref[...] = jnp.maximum(y, 0.0)


def _compiler_params():
    return pltpu.CompilerParams(
        dimension_semantics=("parallel", "parallel"),
        vmem_limit_bytes=48 * 1024 * 1024,   # stays under v7x's 64 MiB physical VMEM
    )


def _make_conv_call(N, H, W, Cp, tile_h, preact):
    T = H // tile_h
    in_specs = [
        # full padded image per batch index; re-DMA'd only when `n` changes
        pl.BlockSpec((1, H + 2, W + 2, Cp), lambda n, t: (n, 0, 0, 0)),
        pl.BlockSpec((9 * Cp, Cp), lambda n, t: (0, 0)),
    ]
    if preact:
        in_specs += [pl.BlockSpec((1, Cp), lambda n, t: (0, 0)),
                     pl.BlockSpec((1, Cp), lambda n, t: (0, 0))]
    return pl.pallas_call(
        functools.partial(_conv3x3_kernel, preact, tile_h, H, W, Cp),
        grid=(N, T),
        in_specs=in_specs,
        out_specs=[pl.BlockSpec((1, tile_h, W, Cp), lambda n, t: (n, t, 0, 0)),
                   pl.BlockSpec((1, 1, 2, Cp), lambda n, t: (n, t, 0, 0))],
        out_shape=[jax.ShapeDtypeStruct((N, H, W, Cp), jnp.float32),
                   jax.ShapeDtypeStruct((N, T, 2, Cp), jnp.float32)],
        scratch_shapes=[pltpu.VMEM((tile_h * W, 9 * Cp), jnp.bfloat16)],
        compiler_params=_compiler_params(),
    )


def _make_finalize_call(N, H, W, Cp, tile_h):
    T = H // tile_h
    tile_spec = pl.BlockSpec((1, tile_h, W, Cp), lambda n, t: (n, t, 0, 0))
    vec_spec = pl.BlockSpec((1, Cp), lambda n, t: (0, 0))
    return pl.pallas_call(
        _finalize_kernel,
        grid=(N, T),
        in_specs=[tile_spec, tile_spec, vec_spec, vec_spec],
        out_specs=tile_spec,
        out_shape=jax.ShapeDtypeStruct((N, H, W, Cp), jnp.float32),
        compiler_params=_compiler_params(),
    )


def _bn_scale_shift(partials, gamma, beta, count):
    """Combine per-tile (sum, sum_sq) partials into folded BN scale/shift (tiny XLA op)."""
    s = jnp.sum(partials, axis=(0, 1))                       # (2, Cp)
    mean = s[0] / count
    var = jnp.maximum(s[1] / count - mean * mean, 0.0)       # biased (training-mode) variance
    scale = gamma * lax.rsqrt(var + EPS)
    shift = beta - mean * scale
    return scale, shift


def basic_block_pallas(x_nchw, w1, g1, b1, w2, g2, b2):
    """BasicBlock forward. x_nchw: (N, C, H, W) f32; conv weights in HWIO (3,3,C,C)."""
    N, C, H, W = x_nchw.shape
    Cp = ((C + LANE - 1) // LANE) * LANE     # lane-dense channel padding
    tile_h = 8 if (H % 8 == 0) else H
    T = H // tile_h
    assert H % tile_h == 0 and T >= 1

    x = jnp.transpose(x_nchw, (0, 2, 3, 1)).astype(jnp.float32)       # NHWC
    x_cp = jnp.pad(x, ((0, 0), (0, 0), (0, 0), (0, Cp - C)))          # channel pad
    x_sp = jnp.pad(x_cp, ((0, 0), (1, 1), (1, 1), (0, 0)))            # + spatial pad (conv1)

    def prep_w(w):
        wp = jnp.zeros((3, 3, Cp, Cp), jnp.float32).at[:, :, :C, :C].set(w)
        return wp.reshape(9 * Cp, Cp).astype(jnp.bfloat16)            # matches im2col layout

    def prep_v(v):
        return jnp.pad(v.astype(jnp.float32), (0, Cp - C))

    w1m, w2m = prep_w(w1), prep_w(w2)
    g1p, b1p, g2p, b2p = prep_v(g1), prep_v(b1), prep_v(g2), prep_v(b2)

    conv1_call = _make_conv_call(N, H, W, Cp, tile_h, preact=False)
    conv2_call = _make_conv_call(N, H, W, Cp, tile_h, preact=True)
    final_call = _make_finalize_call(N, H, W, Cp, tile_h)

    count = N * H * W

    # conv1 (raw) + BN1 partial stats
    raw1, part1 = conv1_call(x_sp, w1m)
    scale1, shift1 = _bn_scale_shift(part1, g1p, b1p, count)

    # bn1+relu fused as conv2 pre-activation; conv2 (raw) + BN2 partial stats
    raw1_sp = jnp.pad(raw1, ((0, 0), (1, 1), (1, 1), (0, 0)))
    raw2, part2 = conv2_call(raw1_sp, w2m,
                             scale1.reshape(1, Cp), shift1.reshape(1, Cp))
    scale2, shift2 = _bn_scale_shift(part2, g2p, b2p, count)

    # bn2 + residual + relu (downsample is None -> identity residual, Cin == Cout, stride 1)
    out_cp = final_call(raw2, x_cp, scale2.reshape(1, Cp), shift2.reshape(1, Cp))
    return jnp.transpose(out_cp[..., :C], (0, 3, 1, 2))               # back to NCHW


# ------------------------- pure-JAX reference -------------------------
def basic_block_ref(x_nchw, w1, g1, b1, w2, g2, b2):
    x = jnp.transpose(x_nchw, (0, 2, 3, 1))
    dn = ('NHWC', 'HWIO', 'NHWC')

    def conv(h, w):
        # same precision recipe as the kernel: bf16 operands, f32 accumulation
        return lax.conv_general_dilated(
            h.astype(jnp.bfloat16), w.astype(jnp.bfloat16), (1, 1), 'SAME',
            dimension_numbers=dn, preferred_element_type=jnp.float32)

    def bn(h, g, b):
        mu = jnp.mean(h, axis=(0, 1, 2), keepdims=True)
        var = jnp.mean((h - mu) ** 2, axis=(0, 1, 2), keepdims=True)
        return (h - mu) * lax.rsqrt(var + EPS) * g + b

    h = jnp.maximum(bn(conv(x, w1), g1, b1), 0.0)
    h = bn(conv(h, w2), g2, b2)
    out = jnp.maximum(h + x, 0.0)
    return jnp.transpose(out, (0, 3, 1, 2))


if __name__ == "__main__":
    # BasicBlock(inplanes=4, planes=4, stride=1, downsample=None)
    N, C, H, W = 2, 4, 16, 16
    key = jax.random.PRNGKey(0)
    kx, k1, k2, kg1, kb1, kg2, kb2 = jax.random.split(key, 7)

    x = jax.random.normal(kx, (N, C, H, W), jnp.float32)
    w1 = jax.random.normal(k1, (3, 3, C, C), jnp.float32) * (2.0 / (9 * C)) ** 0.5
    w2 = jax.random.normal(k2, (3, 3, C, C), jnp.float32) * (2.0 / (9 * C)) ** 0.5
    g1 = 1.0 + 0.1 * jax.random.normal(kg1, (C,), jnp.float32)
    b1 = 0.1 * jax.random.normal(kb1, (C,), jnp.float32)
    g2 = 1.0 + 0.1 * jax.random.normal(kg2, (C,), jnp.float32)
    b2 = 0.1 * jax.random.normal(kb2, (C,), jnp.float32)

    out = jax.block_until_ready(basic_block_pallas(x, w1, g1, b1, w2, g2, b2))
    ref = basic_block_ref(x, w1, g1, b1, w2, g2, b2)

    assert out.shape == (N, C, H, W)
    err = float(jnp.max(jnp.abs(out - ref)))
    assert jnp.allclose(out, ref, rtol=1e-2, atol=1e-2), f"max err {err}"
    print("KERNEL_OK")
</pallas_src>

<mosaic_0001>
module attributes {stable_mosaic.version = 11 : i64} {
  func.func @_conv3x3_kernel(%arg0: i32, %arg1: i32, %arg2: memref<1x18x18x128xf32, #tpu.memory_space<vmem>>, %arg3: memref<1152x128xbf16, #tpu.memory_space<vmem>>, %arg4: memref<1x8x16x128xf32, #tpu.memory_space<vmem>>, %arg5: memref<1x1x2x128xf32, #tpu.memory_space<vmem>>, %arg6: memref<128x1152xbf16, #tpu.memory_space<vmem>>) attributes {dimension_semantics = [#tpu.dimension_semantics<parallel>, #tpu.dimension_semantics<parallel>], iteration_bounds = array<i64: 2, 2>, scalar_prefetch = 0 : i64, scratch_operands = 1 : i64, tpu.core_type = #tpu.core_type<tc>, window_params = [{transform_indices = @transform_0, window_bounds = array<i64: 1, 18, 18, 128>}, {pipeline_mode = #tpu.pipeline_mode<synchronous>, transform_indices = @transform_1, window_bounds = array<i64: 1152, 128>}, {transform_indices = @transform_2, window_bounds = array<i64: 1, 8, 16, 128>}, {transform_indices = @transform_3, window_bounds = array<i64: 1, 1, 2, 128>}]} {
    %c8_i32 = arith.constant 8 : i32
    %0 = arith.muli %arg1, %c8_i32 : i32
    %c0_i32 = arith.constant 0 : i32
    %1 = arith.addi %0, %c0_i32 : i32
    %c0 = arith.constant 0 : index
    %2 = arith.index_cast %1 : i32 to index
    %c0_0 = arith.constant 0 : index
    %c0_1 = arith.constant 0 : index
    %3 = vector.load %arg2[%c0, %2, %c0_0, %c0_1] : memref<1x18x18x128xf32, #tpu.memory_space<vmem>>, vector<1x8x16x128xf32>
    %4 = vector.shape_cast %3 : vector<1x8x16x128xf32> to vector<128x128xf32>
    %5 = arith.truncf %4 : vector<128x128xf32> to vector<128x128xbf16>
    %c0_2 = arith.constant 0 : index
    %c0_3 = arith.constant 0 : index
    %6 = vector.load %arg6[%c0_2, %c0_3] : memref<128x1152xbf16, #tpu.memory_space<vmem>>, vector<128x128xbf16>
    tpu.vector_store %arg6[%c0_2, %c0_3], %5 {strides = array<i32>} : memref<128x1152xbf16, #tpu.memory_space<vmem>>, vector<128x128xbf16>,
    %c0_i32_4 = arith.constant 0 : i32
    %7 = arith.addi %0, %c0_i32_4 : i32
    %c0_5 = arith.constant 0 : index
    %8 = arith.index_cast %7 : i32 to index
    %c1 = arith.constant 1 : index
    %c0_6 = arith.constant 0 : index
    %9 = vector.load %arg2[%c0_5, %8, %c1, %c0_6] : memref<1x18x18x128xf32, #tpu.memory_space<vmem>>, vector<1x8x16x128xf32>
    %10 = vector.shape_cast %9 : vector<1x8x16x128xf32> to vector<128x128xf32>
    %11 = arith.truncf %10 : vector<128x128xf32> to vector<128x128xbf16>
    %c0_7 = arith.constant 0 : index
    %c128 = arith.constant 128 : index
    %12 = vector.load %arg6[%c0_7, %c128] : memref<128x1152xbf16, #tpu.memory_space<vmem>>, vector<128x128xbf16>
    tpu.vector_store %arg6[%c0_7, %c128], %11 {strides = array<i32>} : memref<128x1152xbf16, #tpu.memory_space<vmem>>, vector<128x128xbf16>,
    %c0_i32_8 = arith.constant 0 : i32
    %13 = arith.addi %0, %c0_i32_8 : i32
    %c0_9 = arith.constant 0 : index
    %14 = arith.index_cast %13 : i32 to index
    %c2 = arith.constant 2 : index
    %c0_10 = arith.constant 0 : index
    %15 = vector.load %arg2[%c0_9, %14, %c2, %c0_10] : memref<1x18x18x128xf32, #tpu.memory_space<vmem>>, vector<1x8x16x128xf32>
    %16 = vector.shape_cast %15 : vector<1x8x16x128xf32> to vector<128x128xf32>
    %17 = arith.truncf %16 : vector<128x128xf32> to vector<128x128xbf16>
    %c0_11 = arith.constant 0 : index
    %c256 = arith.constant 256 : index
    %18 = vector.load %arg6[%c0_11, %c256] : memref<128x1152xbf16, #tpu.memory_space<vmem>>, vector<128x128xbf16>
    tpu.vector_store %arg6[%c0_11, %c256], %17 {strides = array<i32>} : memref<128x1152xbf16, #tpu.memory_space<vmem>>, vector<128x128xbf16>,
    %c1_i32 = arith.constant 1 : i32
    %19 = arith.addi %0, %c1_i32 : i32
    %c0_12 = arith.constant 0 : index
    %20 = arith.index_cast %19 : i32 to index
    %c0_13 = arith.constant 0 : index
    %c0_14 = arith.constant 0 : index
    %21 = vector.load %arg2[%c0_12, %20, %c0_13, %c0_14] : memref<1x18x18x128xf32, #tpu.memory_space<vmem>>, vector<1x8x16x128xf32>
    %22 = vector.shape_cast %21 : vector<1x8x16x128xf32> to vector<128x128xf32>
    %23 = arith.truncf %22 : vector<128x128xf32> to vector<128x128xbf16>
    %c0_15 = arith.constant 0 : index
    %c384 = arith.constant 384 : index
    %24 = vector.load %arg6[%c0_15, %c384] : memref<128x1152xbf16, #tpu.memory_space<vmem>>, vector<128x128xbf16>
    tpu.vector_store %arg6[%c0_15, %c384], %23 {strides = array<i32>} : memref<128x1152xbf16, #tpu.memory_space<vmem>>, vector<128x128xbf16>,
    %c1_i32_16 = arith.constant 1 : i32
    %25 = arith.addi %0, %c1_i32_16 : i32
    %c0_17 = arith.constant 0 : index
    %26 = arith.index_cast %25 : i32 to index
    %c1_18 = arith.constant 1 : index
    %c0_19 = arith.constant 0 : index
    %27 = vector.load %arg2[%c0_17, %26, %c1_18, %c0_19] : memref<1x18x18x128xf32, #tpu.memory_space<vmem>>, vector<1x8x16x128xf32>
    %28 = vector.shape_cast %27 : vector<1x8x16x128xf32> to vector<128x128xf32>
    %29 = arith.truncf %28 : vector<128x128xf32> to vector<128x128xbf16>
    %c0_20 = arith.constant 0 : index
    %c512 = arith.constant 512 : index
    %30 = vector.load %arg6[%c0_20, %c512] : memref<128x1152xbf16, #tpu.memory_space<vmem>>, vector<128x128xbf16>
    tpu.vector_store %arg6[%c0_20, %c512], %29 {strides = array<i32>} : memref<128x1152xbf16, #tpu.memory_space<vmem>>, vector<128x128xbf16>,
    %c1_i32_21 = arith.constant 1 : i32
    %31 = arith.addi %0, %c1_i32_21 : i32
    %c0_22 = arith.constant 0 : index
    %32 = arith.index_cast %31 : i32 to index
    %c2_23 = arith.constant 2 : index
    %c0_24 = arith.constant 0 : index
    %33 = vector.load %arg2[%c0_22, %32, %c2_23, %c0_24] : memref<1x18x18x128xf32, #tpu.memory_space<vmem>>, vector<1x8x16x128xf32>
    %34 = vector.shape_cast %33 : vector<1x8x16x128xf32> to vector<128x128xf32>
    %35 = arith.truncf %34 : vector<128x128xf32> to vector<128x128xbf16>
    %c0_25 = arith.constant 0 : index
    %c640 = arith.constant 640 : index
    %36 = vector.load %arg6[%c0_25, %c640] : memref<128x1152xbf16, #tpu.memory_space<vmem>>, vector<128x128xbf16>
    tpu.vector_store %arg6[%c0_25, %c640], %35 {strides = array<i32>} : memref<128x1152xbf16, #tpu.memory_space<vmem>>, vector<128x128xbf16>,
    %c2_i32 = arith.constant 2 : i32
    %37 = arith.addi %0, %c2_i32 : i32
    %c0_26 = arith.constant 0 : index
    %38 = arith.index_cast %37 : i32 to index
    %c0_27 = arith.constant 0 : index
    %c0_28 = arith.constant 0 : index
    %39 = vector.load %arg2[%c0_26, %38, %c0_27, %c0_28] : memref<1x18x18x128xf32, #tpu.memory_space<vmem>>, vector<1x8x16x128xf32>
    %40 = vector.shape_cast %39 : vector<1x8x16x128xf32> to vector<128x128xf32>
    %41 = arith.truncf %40 : vector<128x128xf32> to vector<128x128xbf16>
    %c0_29 = arith.constant 0 : index
    %c768 = arith.constant 768 : index
    %42 = vector.load %arg6[%c0_29, %c768] : memref<128x1152xbf16, #tpu.memory_space<vmem>>, vector<128x128xbf16>
    tpu.vector_store %arg6[%c0_29, %c768], %41 {strides = array<i32>} : memref<128x1152xbf16, #tpu.memory_space<vmem>>, vector<128x128xbf16>,
    %c2_i32_30 = arith.constant 2 : i32
    %43 = arith.addi %0, %c2_i32_30 : i32
    %c0_31 = arith.constant 0 : index
    %44 = arith.index_cast %43 : i32 to index
    %c1_32 = arith.constant 1 : index
    %c0_33 = arith.constant 0 : index
    %45 = vector.load %arg2[%c0_31, %44, %c1_32, %c0_33] : memref<1x18x18x128xf32, #tpu.memory_space<vmem>>, vector<1x8x16x128xf32>
    %46 = vector.shape_cast %45 : vector<1x8x16x128xf32> to vector<128x128xf32>
    %47 = arith.truncf %46 : vector<128x128xf32> to vector<128x128xbf16>
    %c0_34 = arith.constant 0 : index
    %c896 = arith.constant 896 : index
    %48 = vector.load %arg6[%c0_34, %c896] : memref<128x1152xbf16, #tpu.memory_space<vmem>>, vector<128x128xbf16>
    tpu.vector_store %arg6[%c0_34, %c896], %47 {strides = array<i32>} : memref<128x1152xbf16, #tpu.memory_space<vmem>>, vector<128x128xbf16>,
    %c2_i32_35 = arith.constant 2 : i32
    %49 = arith.addi %0, %c2_i32_35 : i32
    %c0_36 = arith.constant 0 : index
    %50 = arith.index_cast %49 : i32 to index
    %c2_37 = arith.constant 2 : index
    %c0_38 = arith.constant 0 : index
    %51 = vector.load %arg2[%c0_36, %50, %c2_37, %c0_38] : memref<1x18x18x128xf32, #tpu.memory_space<vmem>>, vector<1x8x16x128xf32>
    %52 = vector.shape_cast %51 : vector<1x8x16x128xf32> to vector<128x128xf32>
    %53 = arith.truncf %52 : vector<128x128xf32> to vector<128x128xbf16>
    %c0_39 = arith.constant 0 : index
    %c1024 = arith.constant 1024 : index
    %54 = vector.load %arg6[%c0_39, %c1024] : memref<128x1152xbf16, #tpu.memory_space<vmem>>, vector<128x128xbf16>
    tpu.vector_store %arg6[%c0_39, %c1024], %53 {strides = array<i32>} : memref<128x1152xbf16, #tpu.memory_space<vmem>>, vector<128x128xbf16>,
    %c0_40 = arith.constant 0 : index
    %c0_41 = arith.constant 0 : index
    %55 = vector.load %arg6[%c0_40, %c0_41] : memref<128x1152xbf16, #tpu.memory_space<vmem>>, vector<128x1152xbf16>
    %c0_42 = arith.constant 0 : index
    %c0_43 = arith.constant 0 : index
    %56 = vector.load %arg3[%c0_42, %c0_43] : memref<1152x128xbf16, #tpu.memory_space<vmem>>, vector<1152x128xbf16>
    %cst = arith.constant dense<0.000000e+00> : vector<128x128xf32>
    %57 = tpu.matmul %55, %56, %cst {dimension_numbers = #tpu.dot_dimension_numbers<[1], [0], [0], [1], [0, 0, 1, 1], [], []>} : vector<128x1152xbf16>, vector<1152x128xbf16>, vector<128x128xf32> -> vector<128x128xf32>
    %58 = vector.shape_cast %57 : vector<128x128xf32> to vector<1x8x16x128xf32>
    %c0_44 = arith.constant 0 : index
    %c0_45 = arith.constant 0 : index
    %c0_46 = arith.constant 0 : index
    %c0_47 = arith.constant 0 : index
    %59 = vector.load %arg4[%c0_44, %c0_45, %c0_46, %c0_47] : memref<1x8x16x128xf32, #tpu.memory_space<vmem>>, vector<1x8x16x128xf32>
    tpu.vector_store %arg4[%c0_44, %c0_45, %c0_46, %c0_47], %58 {strides = array<i32>} : memref<1x8x16x128xf32, #tpu.memory_space<vmem>>, vector<1x8x16x128xf32>,
    %cst_48 = arith.constant dense<0.000000e+00> : vector<128xf32>
    %60 = vector.multi_reduction <add>, %57, %cst_48 [0] : vector<128x128xf32> to vector<128xf32>
    %61 = vector.shape_cast %60 : vector<128xf32> to vector<1x128xf32>
    %62 = arith.mulf %57, %57 : vector<128x128xf32>
    %cst_49 = arith.constant dense<0.000000e+00> : vector<128xf32>
    %63 = vector.multi_reduction <add>, %62, %cst_49 [0] : vector<128x128xf32> to vector<128xf32>
    %64 = vector.shape_cast %63 : vector<128xf32> to vector<1x128xf32>
    %65 = vector.shape_cast %61 : vector<1x128xf32> to vector<1x1x1x128xf32>
    %c0_50 = arith.constant 0 : index
    %c0_51 = arith.constant 0 : index
    %c0_52 = arith.constant 0 : index
    %c0_53 = arith.constant 0 : index
    %66 = vector.load %arg5[%c0_50, %c0_51, %c0_52, %c0_53] : memref<1x1x2x128xf32, #tpu.memory_space<vmem>>, vector<1x1x1x128xf32>
    tpu.vector_store %arg5[%c0_50, %c0_51, %c0_52, %c0_53], %65 {strides = array<i32>} : memref<1x1x2x128xf32, #tpu.memory_space<vmem>>, vector<1x1x1x128xf32>,
    %67 = vector.shape_cast %64 : vector<1x128xf32> to vector<1x1x1x128xf32>
    %c0_54 = arith.constant 0 : index
    %c0_55 = arith.constant 0 : index
    %c1_56 = arith.constant 1 : index
    %c0_57 = arith.constant 0 : index
    %68 = vector.load %arg5[%c0_54, %c0_55, %c1_56, %c0_57] : memref<1x1x2x128xf32, #tpu.memory_space<vmem>>, vector<1x1x1x128xf32>
    tpu.vector_store %arg5[%c0_54, %c0_55, %c1_56, %c0_57], %67 {strides = array<i32>} : memref<1x1x2x128xf32, #tpu.memory_space<vmem>>, vector<1x1x1x128xf32>,
    return
  }
  func.func @transform_0(%arg0: i32, %arg1: i32) -> (i32, i32, i32, i32) {
    %c0_i32 = arith.constant 0 : i32
    %c0_i32_0 = arith.constant 0 : i32
    %c0_i32_1 = arith.constant 0 : i32
    %c0_i32_2 = arith.constant 0 : i32
    return %arg0, %c0_i32, %c0_i32_0, %c0_i32_1 : i32, i32, i32, i32
  }
  func.func @transform_1(%arg0: i32, %arg1: i32) -> (i32, i32) {
    %c0_i32 = arith.constant 0 : i32
    %c0_i32_0 = arith.constant 0 : i32
    %c0_i32_1 = arith.constant 0 : i32
    return %c0_i32, %c0_i32_0 : i32, i32
  }
  func.func @transform_2(%arg0: i32, %arg1: i32) -> (i32, i32, i32, i32) {
    %c0_i32 = arith.constant 0 : i32
    %c0_i32_0 = arith.constant 0 : i32
    %c0_i32_1 = arith.constant 0 : i32
    return %arg0, %arg1, %c0_i32, %c0_i32_0 : i32, i32, i32, i32
  }
  func.func @transform_3(%arg0: i32, %arg1: i32) -> (i32, i32, i32, i32) {
    %c0_i32 = arith.constant 0 : i32
    %c0_i32_0 = arith.constant 0 : i32
    %c0_i32_1 = arith.constant 0 : i32
    return %arg0, %arg1, %c0_i32, %c0_i32_0 : i32, i32, i32, i32
  }
}

</mosaic_0001>

<bundles_post_ra>
// kernel: tpu_custom_call.1
= control target key start
LH: loop header
LB: loop body
LE: loop exit
PB: predicated region body
PF: predicated region fallthrough
CT: control target
= control target key end

     0   :  { %9 = vsyncpa [#allocation4], 0  ;;  %s3376_s0 = inlined_call_operand.vmem [shape: f32[2,18,18,128], index: 0, kind: input, shape index: {}]   ;;  %s3377_s1 = inlined_call_operand.vmem [shape: bf16[1152,128], index: 1, kind: input, shape index: {}]   ;;  %s3378_s2 = inlined_call_operand.hbm [shape: f32[2,16,16,128], index: 2, kind: output, shape index: {0}]   ;;  %s3379_s3 = inlined_call_operand.hbm [shape: f32[2,2,2,128], index: 3, kind: output, shape index: {1}]  }
   0x1   :  { %11 = vsyncpa [#allocation4 + $0x1], 0 }
   0x2   :  { %12 = vsyncpa [#allocation6], 0 }
   0x3   :  { %14 = vsyncpa [#allocation6 + $0x1], 0  ;;  %s2677_s12 = smov 0   ;;  %s2679_s13 = smov 0  }
   0x4   :  { %s2681_s14 = smov 0   ;;  %s2683_s15 = smov 0  }
   0x5   :  { %s2685_s16 = smov 0   ;;  %s2687_s17 = smov 0  }
   0x6   :  { %s2689_s18 = smov 0   ;;  %s2691_s19 = smov 0  }
   0x7 LB: > { %s1861_s20 = sadd.s32 4294967295, %s2651_s19   ;;  %s1862_s21 = sadd.s32 4294967294, %s2651_s19   ;;  %s2651_s19 = sphi %s2691_s19, %s20_s19   ;;  %s2647_s18 = sphi %s2689_s18, %s3388_s18   ;;  %s2643_s17 = sphi %s2687_s17, %s3387_s17   ;;  %s2639_s16 = sphi %s2685_s16, %s3386_s16   ;;  %s2635_s15 = sphi %s2683_s15, %s3385_s15   ;;  %s2631_s14 = sphi %s2681_s14, %s3384_s14   ;;  %s2627_s13 = sphi %s2679_s13, %s3383_s13   ;;  %s2623_s12 = sphi %s2677_s12, %s3382_s12  }
   0x8   : > { %s29_s22 = sadd.s32 1, %s2643_s17  ;;  %s32_s23 = sadd.s32 1, %s2647_s18 }
   0x9   : > { %p30_p0 = scmp.ge.s32.totalorder %s29_s22, 2  ;;  %p98_p1 = scmp.ne.s32.totalorder %s2631_s14, %s2627_s13 }
   0xa   : > { %p99_p2 = scmp.eq.s32.totalorder %s1861_s20, 3  ;;  %p104_p5 = scmp.ne.s32.totalorder %s2627_s13, %s2623_s12 }
   0xb   : > { %s3390_s22 = smov (%p30_p0, %s29_s22), 0  ;;  %s3392_s23 = smov (!%p30_p0, %s32_s23), %s2647_s18 }
   0xc   : > { %s84_s24 = ssub.s32 %s2643_s17, %s3390_s22  ;;  %p2728_p3 = por %p99_p2, %p98_p1 }
   0xd   : > { %p34_p4 = scmp.ge.s32.totalorder %s3392_s23, 2  ;;  %p105_p6 = scmp.eq.s32.totalorder %s1862_s21, 3 }
   0xe   : > { %p1865_p7 = scmp.ge.s32.totalorder %s2651_s19, 1  ;;  %p162_p9 = scmp.lt.s32.totalorder %s2651_s19, 5 }
   0xf   : > { %s3394_s23 = smov (%p34_p4, %s3392_s23), 0  ;;  %p2737_p8 = por %p105_p6, %p104_p5 }
  0x10   : > { %s83_s27 = ssub.s32 %s2647_s18, %s3394_s23  ;;  %s88_s28 = sadd.s32 1, %s2631_s14 }
  0x11   : > { %s85_s29 = sor.u32 %s84_s24, %s83_s27  ;;  %p163_p10 = pnand %p1865_p7, %p162_p9 }
  0x12   : > { %p86_p11 = scmp.eq.s32.totalorder %s85_s29, 0  ;;  %v2453_v0 = vld [vmem:[%s3377_s1 + $0x40] sm:$0xff] (!%p163_p10)   ;;  %v2457_v4 = vld [vmem:[%s3377_s1 + $0x48] sm:$0xff] (!%p163_p10)   ;;  %v2461_v8 = vld [vmem:[%s3377_s1 + $0x50] sm:$0xff] (!%p163_p10)   ;;  %p191_p12 = scmp.lt.s32.totalorder (!%p163_p10), %s2639_s16, 1 }
  0x13   : > { %166 = sbr.rel (%p163_p10) target bundleno = 468 (0x1d4), region = 28  ;;  %v2454_v1 = vld [vmem:[%s3377_s1 + $0xc0] sm:$0xff] (!%p163_p10)   ;;  %2054 = vmatprep.subr.bf16.mxu0 (!%p163_p10), %v2453_v0  ;;  %v2458_v5 = vld [vmem:[%s3377_s1 + $0xc8] sm:$0xff] (!%p163_p10)   ;;  %v2462_v9 = vld [vmem:[%s3377_s1 + $0xd0] sm:$0xff] (!%p163_p10)   ;;  %s2053_s10 = sshll.u32 (!%p163_p10), %s2635_s15, 4 }
  0x14   : > { %s2746_s30 = scalar_select %p86_p11, %s2631_s14, %s88_s28  }
  0x15   : > { %v2455_v2 = vld [vmem:[%s3377_s1] sm:$0xff] (!%p163_p10)   ;;  %2118 = vmatprep.subr.bf16.mxu1 (!%p163_p10), %v2454_v1  ;;  %v2459_v6 = vld [vmem:[%s3377_s1 + $0x8] sm:$0xff] (!%p163_p10)   ;;  %v2463_v10 = vld [vmem:[%s3377_s1 + $0x10] sm:$0xff] (!%p163_p10)   ;;  %s1870_s29 = smul.u32 (!%p163_p10), 192, %s2635_s15  ;;  %s2047_s11 = sshll.u32 (!%p163_p10), %s2639_s16, 5 }
  0x16   : > { %v2456_v3 = vld [vmem:[%s3377_s1 + $0x80] sm:$0xff] (!%p163_p10)   ;;  %2055 = vmatpush3.bf16.msra.mxu0 (!%p163_p10), %v2455_v2  ;;  %v2460_v7 = vld [vmem:[%s3377_s1 + $0x88] sm:$0xff] (!%p163_p10)   ;;  %v2464_v11 = vld [vmem:[%s3377_s1 + $0x90] sm:$0xff] (!%p163_p10)   ;;  %s3237_s20 = sadd.s32 (!%p163_p10), %s2053_s10, %s2047_s11  ;;  %s2653_s6 = smov (!%p163_p10), [#allocation3]  }
  0x17   : > { %2119 = vmatpush3.bf16.msra.mxu1 (!%p163_p10), %v2456_v3  ;;  %2056 = vmatprep.subr.bf16.mxu0 (!%p163_p10), %v2457_v4  ;;  %v2465_v12 = vld [vmem:[%s3377_s1 + $0x58] sm:$0xff] (!%p163_p10)   ;;  %v2469_v16 = vld [vmem:[%s3377_s1 + $0x60] sm:$0xff] (!%p163_p10)   ;;  %v2473_v20 = vld [vmem:[%s3377_s1 + $0x68] sm:$0xff] (!%p163_p10)   ;;  %s2048_s21 = sshll.u32 (!%p163_p10), %s3237_s20, 7 }
  0x18   : > { %2120 = vmatprep.subr.bf16.mxu1 (!%p163_p10), %v2458_v5  ;;  %v2466_v13 = vld [vmem:[%s3377_s1 + $0xd8] sm:$0xff] (!%p163_p10)   ;;  %v2470_v17 = vld [vmem:[%s3377_s1 + $0xe0] sm:$0xff] (!%p163_p10)   ;;  %v2474_v21 = vld [vmem:[%s3377_s1 + $0xe8] sm:$0xff] (!%p163_p10)   ;;  %s3262_s5 = scalar_lea.hbm (!%p163_p10), %s3378_s2, %s2048_s21 }
  0x19   : > { %v2467_v14 = vld [vmem:[%s3377_s1 + $0x18] sm:$0xff] (!%p163_p10)   ;;  %v2471_v18 = vld [vmem:[%s3377_s1 + $0x20] sm:$0xff] (!%p163_p10)   ;;  %v2475_v22 = vld [vmem:[%s3377_s1 + $0x28] sm:$0xff] (!%p163_p10)  }
  0x1a   : > { %2057 = vmatpush3.bf16.msra.mxu0 %v2459_v6  ;;  %v2468_v15 = vld [vmem:[%s3377_s1 + $0x98] sm:$0xff]   ;;  %s192_s24 = scalar_select %p191_p12, %s2639_s16, 1  ;;  %v2472_v19 = vld [vmem:[%s3377_s1 + $0xa0] sm:$0xff]   ;;  %v2476_v23 = vld [vmem:[%s3377_s1 + $0xa8] sm:$0xff]  }
  0x1b   : > { %2121 = vmatpush3.bf16.msra.mxu1 %v2460_v7  ;;  %2058 = vmatprep.subr.bf16.mxu0 %v2461_v8  ;;  %v2477_v24 = vld [vmem:[%s3377_s1 + $0x70] sm:$0xff]   ;;  %v2481_v28 = vld [vmem:[%s3377_s1 + $0x78] sm:$0xff]   ;;  %v2485_v44 = vld [vmem:[%s3377_s1 + $0x140] sm:$0xff]  }
  0x1c   : > { %2122 = vmatprep.subr.bf16.mxu1 %v2462_v9  ;;  %s2374_s9 = smul.u32 432, %s192_s24  ;;  %v2478_v25 = vld [vmem:[%s3377_s1 + $0xf0] sm:$0xff]   ;;  %v2482_v29 = vld [vmem:[%s3377_s1 + $0xf8] sm:$0xff]   ;;  %v2486_v45 = vld [vmem:[%s3377_s1 + $0x100] sm:$0xff]  }
  0x1d   : > { %v2479_v26 = vld [vmem:[%s3377_s1 + $0x30] sm:$0xff]   ;;  %v2483_v30 = vld [vmem:[%s3377_s1 + $0x38] sm:$0xff]   ;;  %v2487_v54 = vld [vmem:[%s3377_s1 + $0x148] sm:$0xff]  }
  0x1e   : > { %2059 = vmatpush3.bf16.msra.mxu0 %v2463_v10  ;;  %s195_s7 = scalar_lea.vmem %s3376_s0, %s2374_s9  ;;  %v2480_v27 = vld [vmem:[%s3377_s1 + $0xb0] sm:$0xff]   ;;  %v2484_v31 = vld [vmem:[%s3377_s1 + $0xb8] sm:$0xff]   ;;  %v2488_v55 = vld [vmem:[%s3377_s1 + $0x108] sm:$0xff]  }
  0x1f   : > { %2123 = vmatpush3.bf16.msra.mxu1 %v2464_v11  ;;  %2060 = vmatprep.subr.bf16.mxu0 %v2465_v12  ;;  %s2844_s28 = scalar_lea.vmem %s195_s7, %s1870_s29  ;;  %v2489_v63 = vld [vmem:[%s3377_s1 + $0x150] sm:$0xff]   ;;  %v2490_v2 = vld [vmem:[%s3377_s1 + $0x1c0] sm:$0xff]   ;;  %v2493_v11 = vld [vmem:[%s3377_s1 + $0x158] sm:$0xff]  }
  0x20   : > { %2124 = vmatprep.subr.bf16.mxu1 %v2466_v13  ;;  %v233_v32 = vld [vmem:[%s2844_s28 + $0x1] sm:$0xff]  ;;  %v234_v33 = vld [vmem:[%s2844_s28 + $0x9] sm:$0xff]  ;;  %v1873_v34 = vld [vmem:[%s2844_s28 + $0x18] sm:$0xff] }
  0x21   : > { %v249_v35 = vpack.c.bf16 %v234_v33, %v233_v32  ;;  %v1874_v36 = vld [vmem:[%s2844_s28 + $0x20] sm:$0xff]  ;;  %v202_v38 = vld [vmem:[%s2844_s28 + $0x8] sm:$0xff]  ;;  %v1875_v48 = vld [vmem:[%s2844_s28 + $0x30] sm:$0xff] }
  0x22   : > { %2061 = vmatpush3.bf16.msra.mxu0 %v2467_v14  ;;  %v201_v37 = vld [vmem:[%s2844_s28] sm:$0xff]  ;;  %v316_v39 = vpack.c.bf16 %v1874_v36, %v1873_v34  ;;  %v266_v42 = vld [vmem:[%s2844_s28 + $0xa] sm:$0xff]  ;;  %v1876_v49 = vld [vmem:[%s2844_s28 + $0x38] sm:$0xff] }
  0x23   : > { %2125 = vmatpush3.bf16.msra.mxu1 %v2468_v15  ;;  %2062 = vmatprep.subr.bf16.mxu0 %v2469_v16  ;;  %v217_v40 = vpack.c.bf16 %v202_v38, %v201_v37  ;;  %v265_v41 = vld [vmem:[%s2844_s28 + $0x2] sm:$0xff]  ;;  %v235_v46 = vld [vmem:[%s2844_s28 + $0x19] sm:$0xff]  ;;  %v2872_v51 = vpack.c.bf16 %v1876_v49, %v1875_v48  ;;  %v237_v56 = vld [vmem:[%s2844_s28 + $0x31] sm:$0xff] }
  0x24   : > { %2126 = vmatprep.subr.bf16.mxu1 %v2470_v17  ;;  %1175 = vmatprep.mubr.bf16.mxu0 %v249_v35  ;;  %v281_v43 = vpack.c.bf16 %v266_v42, %v265_v41  ;;  %v236_v47 = vld [vmem:[%s2844_s28 + $0x21] sm:$0xff]  ;;  %v238_v58 = vld [vmem:[%s2844_s28 + $0x39] sm:$0xff]  ;;  %v1878_v60 = vld [vmem:[%s2844_s28 + $0x50] sm:$0xff] }
  0x25   : > { %1272 = vmatprep.mubr.bf16.mxu1 %v316_v39  ;;  %v2870_v50 = vpack.c.bf16 %v236_v47, %v235_v46  ;;  %v267_v52 = vld [vmem:[%s2844_s28 + $0x1a] sm:$0xff]  ;;  %v268_v53 = vld [vmem:[%s2844_s28 + $0x22] sm:$0xff]  ;;  %v2890_v61 = vpack.c.bf16 %v238_v58, %v237_v56  ;;  %v269_v0 = vld [vmem:[%s2844_s28 + $0x32] sm:$0xff] }
  0x26   : > { %2063 = vmatpush3.bf16.msra.mxu0 %v2471_v18  ;;  %v2885_v57 = vpack.c.bf16 %v268_v53, %v267_v52  ;;  %v1877_v59 = vld [vmem:[%s2844_s28 + $0x48] sm:$0xff]  ;;  %v270_v1 = vld [vmem:[%s2844_s28 + $0x3a] sm:$0xff]  ;;  %v2491_v3 = vld [vmem:[%s3377_s1 + $0x110] sm:$0xff]  }
  0x27   : > { %2127 = vmatpush3.bf16.msra.mxu1 %v2472_v19  ;;  %2064 = vmatprep.subr.bf16.mxu0 %v2473_v20  ;;  %v2892_v62 = vpack.c.bf16 %v1878_v60, %v1877_v59  ;;  %v2492_v4 = vld [vmem:[%s3377_s1 + $0x180] sm:$0xff]   ;;  %v239_v5 = vld [vmem:[%s2844_s28 + $0x49] sm:$0xff]  ;;  %v240_v6 = vld [vmem:[%s2844_s28 + $0x51] sm:$0xff]  ;;  %v2915_v9 = vpack.c.bf16 %v270_v1, %v269_v0 }
  0x28   : > { %2128 = vmatprep.subr.bf16.mxu1 %v2474_v21  ;;  %v1879_v7 = vld [vmem:[%s2844_s28 + $0x60] sm:$0xff]  ;;  %v1880_v8 = vld [vmem:[%s2844_s28 + $0x68] sm:$0xff]  ;;  %v2917_v10 = vpack.c.bf16 %v240_v6, %v239_v5  ;;  %v2495_v14 = vld [vmem:[%s3377_s1 + $0x118] sm:$0xff]  }
  0x29   : > { %v2922_v12 = vpack.c.bf16 %v1880_v8, %v1879_v7  ;;  %v2494_v13 = vld [vmem:[%s3377_s1 + $0x1c8] sm:$0xff]   ;;  %v272_v17 = vld [vmem:[%s2844_s28 + $0x52] sm:$0xff]  ;;  %v1882_v21 = vld [vmem:[%s2844_s28 + $0x80] sm:$0xff] }
  0x2a   : > { %2065 = vmatpush3.bf16.msra.mxu0 %v2475_v22  ;;  %v271_v15 = vld [vmem:[%s2844_s28 + $0x4a] sm:$0xff]  ;;  %v241_v18 = vld [vmem:[%s2844_s28 + $0x61] sm:$0xff]  ;;  %v1881_v20 = vld [vmem:[%s2844_s28 + $0x78] sm:$0xff] }
  0x2b   : > { %2129 = vmatpush3.bf16.msra.mxu1 %v2476_v23  ;;  %2066 = vmatprep.subr.bf16.mxu0 %v2477_v24  ;;  %v2496_v16 = vld [vmem:[%s3377_s1 + $0x188] sm:$0xff]   ;;  %v2497_v22 = vld [vmem:[%s3377_s1 + $0x160] sm:$0xff]   ;;  %v2498_v23 = vld [vmem:[%s3377_s1 + $0x1d0] sm:$0xff]   ;;  %v2949_v24 = vpack.c.bf16 %v272_v17, %v271_v15 }
  0x2c   : > { %2130 = vmatprep.subr.bf16.mxu1 %v2478_v25  ;;  %v242_v19 = vld [vmem:[%s2844_s28 + $0x69] sm:$0xff]  ;;  %v244_v32 = vld [vmem:[%s2844_s28 + $0x81] sm:$0xff]  ;;  %v1884_v34 = vld [vmem:[%s2844_s28 + $0x98] sm:$0xff] }
  0x2d   : > { %v2951_v25 = vpack.c.bf16 %v242_v19, %v241_v18  ;;  %v1883_v33 = vld [vmem:[%s2844_s28 + $0x90] sm:$0xff]  ;;  %v2501_v35 = vld [vmem:[%s3377_s1 + $0x168] sm:$0xff]   ;;  %v2502_v36 = vld [vmem:[%s3377_s1 + $0x1d8] sm:$0xff]  }
  0x2e   : > { %2067 = vmatpush3.bf16.msra.mxu0 %v2479_v26  ;;  %v2499_v26 = vld [vmem:[%s3377_s1 + $0x120] sm:$0xff]   ;;  %v2503_v37 = vld [vmem:[%s3377_s1 + $0x128] sm:$0xff]   ;;  %v2504_v38 = vld [vmem:[%s3377_s1 + $0x198] sm:$0xff]   ;;  %v2987_v41 = vpack.c.bf16 %v1884_v34, %v1883_v33 }
  0x2f   : > { %2131 = vmatpush3.bf16.msra.mxu1 %v2480_v27  ;;  %2068 = vmatprep.subr.bf16.mxu0 %v2481_v28  ;;  %v2956_v27 = vpack.c.bf16 %v1882_v21, %v1881_v20  ;;  %v2500_v28 = vld [vmem:[%s3377_s1 + $0x190] sm:$0xff]   ;;  %v246_v46 = vld [vmem:[%s2844_s28 + $0x99] sm:$0xff]  ;;  %v1885_v48 = vld [vmem:[%s2844_s28 + $0xa8] sm:$0xff] }
  0x30   : > { %2132 = vmatprep.subr.bf16.mxu1 %v2482_v29  ;;  %v273_v29 = vld [vmem:[%s2844_s28 + $0x62] sm:$0xff]  ;;  %v2505_v42 = vld [vmem:[%s3377_s1 + $0x170] sm:$0xff]   ;;  %v2511_v60 = vld [vmem:[%s3377_s1 + $0x178] sm:$0xff]  }
  0x31   : > { %v2506_v47 = vld [vmem:[%s3377_s1 + $0x1e0] sm:$0xff]   ;;  %v1886_v49 = vld [vmem:[%s2844_s28 + $0xb0] sm:$0xff]  ;;  %v1888_v5 = vld [vmem:[%s2844_s28 + $0xc8] sm:$0xff] }
  0x32   : > { %2069 = vmatpush3.bf16.msra.mxu0 %v2483_v30  ;;  %v274_v30 = vld [vmem:[%s2844_s28 + $0x6a] sm:$0xff]  ;;  %v2508_v53 = vld [vmem:[%s3377_s1 + $0x1a0] sm:$0xff]   ;;  %v3021_v59 = vpack.c.bf16 %v1886_v49, %v1885_v48  ;;  %v2513_v6 = vld [vmem:[%s3377_s1 + $0x138] sm:$0xff]  }
  0x33   : > { %2133 = vmatpush3.bf16.msra.mxu1 %v2484_v31  ;;  %2182 = vmatprep.subr.bf16.mxu0 %v2485_v44  ;;  %v243_v31 = vld [vmem:[%s2844_s28 + $0x79] sm:$0xff]  ;;  %v276_v44 = vld [vmem:[%s2844_s28 + $0x82] sm:$0xff]  ;;  %v2507_v52 = vld [vmem:[%s3377_s1 + $0x130] sm:$0xff]  }
  0x34   : > { %2246 = vmatprep.subr.bf16.mxu1 %v2490_v2  ;;  %v278_v0 = vld [vmem:[%s2844_s28 + $0x9a] sm:$0xff]  ;;  %v247_v1 = vld [vmem:[%s2844_s28 + $0xa9] sm:$0xff]  ;;  %v248_v2 = vld [vmem:[%s2844_s28 + $0xb1] sm:$0xff] }
  0x35   : > { %1176 = vmatmul.mubr.bf16.vlgmr.msra.gmra.mrb[0].mxu0 %v217_v40  ;;  %v2985_v40 = vpack.c.bf16 %v244_v32, %v243_v31  ;;  %v2514_v7 = vld [vmem:[%s3377_s1 + $0x1b0] sm:$0xff]   ;;  %v2515_v8 = vld [vmem:[%s3377_s1 + $0x1f8] sm:$0xff]   ;;  %v2517_v15 = vld [vmem:[%s3377_s1 + $0x200] sm:$0xff]  }
  0x36   : > { %1273 = vmatmul.mubr.bf16.vlgmr.msra.gmra.mrb[0].mxu1 %v281_v43  ;;  %2183 = vmatpush3.bf16.msra.mxu0 %v2486_v45  ;;  %v275_v43 = vld [vmem:[%s2844_s28 + $0x7a] sm:$0xff]  ;;  %v245_v45 = vld [vmem:[%s2844_s28 + $0x91] sm:$0xff]  ;;  %v2518_v20 = vld [vmem:[%s3377_s1 + $0x208] sm:$0xff]  }
  0x37   : > { %1183 = vmatprep.mubr.bf16.mxu0 %v2870_v50  ;;  %1280 = vmatprep.mubr.bf16.mxu1 %v2872_v51  ;;  %v3017_v56 = vpack.c.bf16 %v276_v44, %v275_v43  ;;  %v3019_v58 = vpack.c.bf16 %v246_v46, %v245_v45  ;;  %v279_v17 = vld [vmem:[%s2844_s28 + $0xaa] sm:$0xff]  ;;  %v280_v18 = vld [vmem:[%s2844_s28 + $0xb2] sm:$0xff]  ;;  %v1938_v31 = vld [vmem:[%s2844_s28 + $0xe0] sm:$0xff] }
  0x38   : > { %2184 = vmatprep.subr.bf16.mxu0 %v2487_v54  ;;  %2247 = vmatpush3.bf16.msra.mxu1 %v2492_v4  ;;  %v2509_v54 = vld [vmem:[%s3377_s1 + $0x1e8] sm:$0xff]   ;;  %v1887_v4 = vld [vmem:[%s2844_s28 + $0xc0] sm:$0xff]  ;;  %v3066_v19 = vpack.c.bf16 %v280_v18, %v279_v17  ;;  %v2519_v21 = vld [vmem:[%s3377_s1 + $0x210] sm:$0xff]  }
  0x39   : > { %2248 = vmatprep.subr.bf16.mxu1 %v2494_v13  ;;  %v1969_v33 = vld [vmem:[%s2844_s28 + $0xda] sm:$0xff]  ;;  %v1970_v34 = vld [vmem:[%s2844_s28 + $0xe2] sm:$0xff] }
  0x3a   : > { %2185 = vmatpush3.bf16.msra.mxu0 %v2488_v55  ;;  %v2510_v55 = vld [vmem:[%s3377_s1 + $0x1a8] sm:$0xff]  }
  0x3b   : > { %2186 = vmatprep.subr.bf16.mxu0 %v2489_v63  ;;  %v277_v63 = vld [vmem:[%s2844_s28 + $0x92] sm:$0xff] }
  0x3c   : > { %2249 = vmatpush3.bf16.msra.mxu1 %v2496_v16  ;;  %v3051_v13 = vpack.c.bf16 %v278_v0, %v277_v63  ;;  %v3058_v16 = vpack.c.bf16 %v1888_v5, %v1887_v4 }
  0x3d   : > { %1184 = vmatmul.mubr.bf16.gmra.mrb[4].mxu0 %v316_v39  ;;  %2250 = vmatprep.subr.bf16.mxu1 %v2498_v23  ;;  %v2983_v39 = vpack.c.bf16 %v274_v30, %v273_v29  ;;  %v1919_v23 = vld [vmem:[%s2844_s28 + $0xc2] sm:$0xff]  ;;  %v1937_v30 = vld [vmem:[%s2844_s28 + $0xd8] sm:$0xff] }
  0x3e   : > { %1281 = vmatmul.mubr.bf16.gmra.mrb[4].mxu1 %v2885_v57  ;;  %1191 = vmatprep.mubr.bf16.mxu0 %v2890_v61  ;;  %v422_v32 = vpack.c.bf16 %v1938_v31, %v1937_v30 }
  0x3f   : > { %1288 = vmatprep.mubr.bf16.mxu1 %v2892_v62  ;;  %2187 = vmatpush3.bf16.msra.mxu0 %v2491_v3  ;;  %v2512_v3 = vld [vmem:[%s3377_s1 + $0x1f0] sm:$0xff]  }
  0x40   : > { %2188 = vmatprep.subr.bf16.mxu0 %v2493_v11  ;;  %2251 = vmatpush3.bf16.msra.mxu1 %v2500_v28  ;;  %v2516_v11 = vld [vmem:[%s3377_s1 + $0x1b8] sm:$0xff]  }
  0x41   : > { %2252 = vmatprep.subr.bf16.mxu1 %v2502_v36 }
  0x43   : > { %2189 = vmatpush3.bf16.msra.mxu0 %v2495_v14  ;;  %v3053_v14 = vpack.c.bf16 %v248_v2, %v247_v1 }
  0x44   : > { %2190 = vmatprep.subr.bf16.mxu0 %v2497_v22  ;;  %2253 = vmatpush3.bf16.msra.mxu1 %v2504_v38 }
  0x45   : > { %1192 = vmatmul.mubr.bf16.gmra.mrb[8].mxu0 %v2872_v51  ;;  %2254 = vmatprep.subr.bf16.mxu1 %v2506_v47 }
  0x46   : > { %1289 = vmatmul.mubr.bf16.gmra.mrb[8].mxu1 %v2915_v9  ;;  %1199 = vmatprep.mubr.bf16.mxu0 %v2917_v10 }
  0x47   : > { %1296 = vmatprep.mubr.bf16.mxu1 %v2922_v12  ;;  %2191 = vmatpush3.bf16.msra.mxu0 %v2499_v26  ;;  %v1953_v26 = vld [vmem:[%s2844_s28 + $0xd9] sm:$0xff] }
  0x48   : > { %2192 = vmatprep.subr.bf16.mxu0 %v2501_v35  ;;  %2255 = vmatpush3.bf16.msra.mxu1 %v2508_v53  ;;  %v486_v35 = vpack.c.bf16 %v1970_v34, %v1969_v33 }
  0x49   : > { %2256 = vmatprep.subr.bf16.mxu1 %v2509_v54 }
  0x4b   : > { %2193 = vmatpush3.bf16.msra.mxu0 %v2503_v37 }
  0x4c   : > { %2194 = vmatprep.subr.bf16.mxu0 %v2505_v42  ;;  %2257 = vmatpush3.bf16.msra.mxu1 %v2510_v55 }
  0x4d   : > { %1200 = vmatmul.mubr.bf16.gmra.mrb[12].mxu0 %v2892_v62  ;;  %2258 = vmatprep.subr.bf16.mxu1 %v2512_v3 }
  0x4e   : > { %1297 = vmatmul.mubr.bf16.gmra.mrb[12].mxu1 %v2949_v24  ;;  %1207 = vmatprep.mubr.bf16.mxu0 %v2951_v25 }
  0x4f   : > { %1304 = vmatprep.mubr.bf16.mxu1 %v2956_v27  ;;  %2195 = vmatpush3.bf16.msra.mxu0 %v2507_v52 }
  0x50   : > { %2196 = vmatprep.subr.bf16.mxu0 %v2511_v60  ;;  %2259 = vmatpush3.bf16.msra.mxu1 %v2514_v7 }
  0x51   : > { %2260 = vmatprep.subr.bf16.mxu1 %v2515_v8 }
  0x53   : > { %2197 = vmatpush3.bf16.msra.mxu0 %v2513_v6 }
  0x54   : > { %2326 = vmatprep.subr.bf16.mxu0 %v2517_v15  ;;  %2261 = vmatpush3.bf16.msra.mxu1 %v2516_v11 }
  0x55   : > { %1208 = vmatmul.mubr.bf16.gmra.mrb[16].mxu0 %v2922_v12  ;;  %2358 = vmatprep.subr.bf16.mxu1 %v2517_v15 }
  0x56   : > { %1305 = vmatmul.mubr.bf16.gmra.mrb[16].mxu1 %v2983_v39  ;;  %1215 = vmatprep.mubr.bf16.mxu0 %v2985_v40 }
  0x57   : > { %1312 = vmatprep.mubr.bf16.mxu1 %v2987_v41 }
  0x5d   : > { %1216 = vmatmul.mubr.bf16.gmra.mrb[20].mxu0 %v2956_v27 }
  0x5e   : > { %1313 = vmatmul.mubr.bf16.gmra.mrb[20].mxu1 %v3017_v56  ;;  %1223 = vmatprep.mubr.bf16.mxu0 %v3019_v58 }
  0x5f   : > { %1320 = vmatprep.mubr.bf16.mxu1 %v3021_v59 }
  0x65   : > { %1224 = vmatmul.mubr.bf16.gmra.mrb[24].mxu0 %v2987_v41 }
  0x66   : > { %1321 = vmatmul.mubr.bf16.gmra.mrb[24].mxu1 %v3051_v13  ;;  %1231 = vmatprep.mubr.bf16.mxu0 %v3053_v14 }
  0x67   : > { %1328 = vmatprep.mubr.bf16.mxu1 %v3058_v16 }
  0x6d   : > { %1232 = vmatmul.mubr.bf16.gmra.mrb[28].mxu0 %v3021_v59 }
  0x6e   : > { %1329 = vmatmul.mubr.bf16.gmra.mrb[28].mxu1 %v3066_v19  ;;  %1369 = vmatprep.mubr.bf16.mxu0 %v2885_v57  ;;  %v2522_v57 = vld [vmem:[%s3377_s1 + $0x228] sm:$0xff]  }
  0x6f   : > { %1466 = vmatprep.mubr.bf16.mxu1 %v2890_v61 }
  0x75   : > { %1370 = vmatmul.mubr.bf16.vlgmr.msra.gmra.mrb[32].mxu0 %v2870_v50  ;;  %v2520_v50 = vld [vmem:[%s3377_s1 + $0x218] sm:$0xff]  }
  0x76   : > { %1467 = vmatmul.mubr.bf16.vlgmr.msra.gmra.mrb[32].mxu1 %v2872_v51  ;;  %2327 = vmatpush3.bf16.msra.mxu0 %v2517_v15  ;;  %v2521_v51 = vld [vmem:[%s3377_s1 + $0x220] sm:$0xff]  }
  0x77   : > { %1377 = vmatprep.mubr.bf16.mxu0 %v2915_v9  ;;  %1474 = vmatprep.mubr.bf16.mxu1 %v2917_v10 }
  0x78   : > { %2328 = vmatprep.subr.bf16.mxu0 %v2518_v20  ;;  %2366 = vmatpush3.bf16.msra.mxu1 %v2517_v15 }
  0x79   : > { %2359 = vmatprep.subr.bf16.mxu1 %v2518_v20 }
  0x7a   : > { %2329 = vmatpush3.bf16.msra.mxu0 %v2518_v20 }
  0x7b   : > { %2330 = vmatprep.subr.bf16.mxu0 %v2519_v21 }
  0x7c   : > { %2367 = vmatpush3.bf16.msra.mxu1 %v2518_v20 }
  0x7d   : > { %1378 = vmatmul.mubr.bf16.gmra.mrb[36].mxu0 %v2890_v61  ;;  %2360 = vmatprep.subr.bf16.mxu1 %v2519_v21  ;;  %v2523_v61 = vld [vmem:[%s3377_s1 + $0x230] sm:$0xff]  }
  0x7e   : > { %1475 = vmatmul.mubr.bf16.gmra.mrb[36].mxu1 %v2892_v62  ;;  %1385 = vmatprep.mubr.bf16.mxu0 %v2949_v24  ;;  %v2524_v62 = vld [vmem:[%s3377_s1 + $0x238] sm:$0xff]  }
  0x7f   : > { %1482 = vmatprep.mubr.bf16.mxu1 %v2951_v25  ;;  %2331 = vmatpush3.bf16.msra.mxu0 %v2519_v21 }
  0x80   : > { %2332 = vmatprep.subr.bf16.mxu0 %v2520_v50  ;;  %2368 = vmatpush3.bf16.msra.mxu1 %v2519_v21 }
  0x81   : > { %2361 = vmatprep.subr.bf16.mxu1 %v2520_v50 }
  0x83   : > { %2333 = vmatpush3.bf16.msra.mxu0 %v2520_v50 }
  0x84   : > { %2334 = vmatprep.subr.bf16.mxu0 %v2521_v51  ;;  %2369 = vmatpush3.bf16.msra.mxu1 %v2520_v50 }
  0x85   : > { %1386 = vmatmul.mubr.bf16.gmra.mrb[40].mxu0 %v2917_v10  ;;  %2362 = vmatprep.subr.bf16.mxu1 %v2521_v51  ;;  %v1951_v10 = vld [vmem:[%s2844_s28 + $0xc1] sm:$0xff] }
  0x86   : > { %1483 = vmatmul.mubr.bf16.gmra.mrb[40].mxu1 %v2922_v12  ;;  %1393 = vmatprep.mubr.bf16.mxu0 %v2983_v39  ;;  %v1952_v12 = vld [vmem:[%s2844_s28 + $0xc9] sm:$0xff] }
  0x87   : > { %1490 = vmatprep.mubr.bf16.mxu1 %v2985_v40  ;;  %2335 = vmatpush3.bf16.msra.mxu0 %v2521_v51  ;;  %v453_v22 = vpack.c.bf16 %v1952_v12, %v1951_v10 }
  0x88   : > { %2336 = vmatprep.subr.bf16.mxu0 %v2522_v57  ;;  %2370 = vmatpush3.bf16.msra.mxu1 %v2521_v51 }
  0x89   : > { %2363 = vmatprep.subr.bf16.mxu1 %v2522_v57 }
  0x8b   : > { %2337 = vmatpush3.bf16.msra.mxu0 %v2522_v57 }
  0x8c   : > { %2338 = vmatprep.subr.bf16.mxu0 %v2523_v61  ;;  %2371 = vmatpush3.bf16.msra.mxu1 %v2522_v57 }
  0x8d   : > { %1394 = vmatmul.mubr.bf16.gmra.mrb[44].mxu0 %v2951_v25  ;;  %2364 = vmatprep.subr.bf16.mxu1 %v2523_v61  ;;  %v1920_v25 = vld [vmem:[%s2844_s28 + $0xca] sm:$0xff] }
  0x8e   : > { %1491 = vmatmul.mubr.bf16.gmra.mrb[44].mxu1 %v2956_v27  ;;  %1401 = vmatprep.mubr.bf16.mxu0 %v3017_v56  ;;  %v1954_v27 = vld [vmem:[%s2844_s28 + $0xe1] sm:$0xff]  ;;  %v387_v28 = vpack.c.bf16 %v1920_v25, %v1919_v23  ;;  %s3203_s28 = sand.u32 1, %s2627_s13  }
  0x8f   : > { %1498 = vmatprep.mubr.bf16.mxu1 %v3019_v58  ;;  %2339 = vmatpush3.bf16.msra.mxu0 %v2523_v61  ;;  %v454_v29 = vpack.c.bf16 %v1954_v27, %v1953_v26  ;;  %s1866_s7 = sshll.u32 %s3203_s28, 7  ;;  %s1705_s24 = scalar_lea.sflag [#allocation4], %s3203_s28 }
  0x90   : > { %2340 = vmatprep.subr.bf16.mxu0 %v2524_v62  ;;  %2372 = vmatpush3.bf16.msra.mxu1 %v2523_v61  ;;  %s3212_s8 = scalar_lea.vmem [#allocation3], %s1866_s7  ;;  %s2529_s7 = sshll.u32 %s2653_s6, 4  ;;  %s2530_s7 = int_to_ptr.vmem [resolvable:$false] %s2529_s7 }
  0x91   : > { %2365 = vmatprep.subr.bf16.mxu1 %v2524_v62  ;;  %s1726_s27 = sshll.u32 %s3212_s8, 4  ;;  %s2531_s10 = scalar_lea.vmem %s2530_s7, 4096  ;;  %s3264_s27 = int_to_ptr.vmem [resolvable:$true] %s1726_s27 }
  0x92   : > { %s2525_s29 = scalar_lea.vmem %s3264_s27, 2048  ;;  %p2532_p2 = scmp.lt.s32.totalorder %s3264_s27, %s2530_s7 }
  0x93   : > { %2341 = vmatpush3.bf16.msra.mxu0 %v2524_v62  ;;  %p2526_p13 = scmp.ne.s32.totalorder %s3264_s27, %s2525_s29  ;;  %p2533_p4 = scmp.lt.s32.totalorder %s2531_s10, %s2525_s29 }
  0x94   : > { %2373 = vmatpush3.bf16.msra.mxu1 %v2524_v62 }
  0x95   : > { %1402 = vmatmul.mubr.bf16.gmra.mrb[48].mxu0 %v2985_v40  ;;  %p2527_p0 = pnand %p2526_p13, %p2728_p3  ;;  %p2534_p5 = por %p2533_p4, %p2532_p2 }
  0x96   : > { %1499 = vmatmul.mubr.bf16.gmra.mrb[48].mxu1 %v2987_v41  ;;  %1409 = vmatprep.mubr.bf16.mxu0 %v3051_v13 }
  0x97   : > { %1506 = vmatprep.mubr.bf16.mxu1 %v3053_v14  ;;  %p2528_p1 = pneg %p2527_p0 }
  0x99   : > { %p2535_p6 = pnand %p2534_p5, %p2528_p1 }
  0x9d   : > { %1410 = vmatmul.mubr.bf16.gmra.mrb[52].mxu0 %v3019_v58 }
  0x9e   : > { %1507 = vmatmul.mubr.bf16.gmra.mrb[52].mxu1 %v3021_v59  ;;  %1417 = vmatprep.mubr.bf16.mxu0 %v3066_v19 }
  0x9f   : > { %1514 = vmatprep.mubr.bf16.mxu1 %v453_v22 }
  0xa5   : > { %1418 = vmatmul.mubr.bf16.gmra.mrb[56].mxu0 %v3053_v14 }
  0xa6   : > { %1515 = vmatmul.mubr.bf16.gmra.mrb[56].mxu1 %v3058_v16  ;;  %1425 = vmatprep.mubr.bf16.mxu0 %v387_v28 }
  0xa7   : > { %1522 = vmatprep.mubr.bf16.mxu1 %v454_v29 }
  0xad   : > { %1426 = vmatmul.mubr.bf16.gmra.mrb[60].mxu0 %v453_v22 }
  0xae   : > { %1523 = vmatmul.mubr.bf16.gmra.mrb[60].mxu1 %v422_v32  ;;  %2342 = vmatprep.mubr.bf16.mxu0 %v2915_v9 }
  0xaf   : > { %2350 = vmatprep.mubr.bf16.mxu1 %v3051_v13 }
  0xb5   : > { %2343 = vmatmul.mubr.bf16.vlgmr.msra.gmra.mrb[64].mxu0 %v2949_v24 }
  0xb6   : > { %2351 = vmatmul.mubr.bf16.vlgmr.msra.gmra.mrb[64].mxu1 %v3066_v19  ;;  %2346 = vmatprep.mubr.bf16.mxu0 %v2983_v39 }
  0xb7   : > { %2354 = vmatprep.mubr.bf16.mxu1 %v387_v28 }
  0xbd   : > { %2347 = vmatmul.mubr.bf16.gmra.mrb[68].mxu0 %v3017_v56 }
  0xbe   : > { %2355 = vmatmul.mubr.bf16.gmra.mrb[68].mxu1 %v486_v35 }
 0x108   : > { %v2070_v36 = vpop.f32.mrb[0].mxu0 }
 0x109   : > { %v2134_v37 = vpop.f32.mrb[0].mxu1  ;;  %v2071_v38 = vpop.f32.mrb[1].mxu0 }
 0x10a   : > { %v2072_v40 = vadd.f32 %v2071_v38, %v2070_v36  ;;  %v2135_v9 = vpop.f32.mrb[1].mxu1  ;;  %v2073_v41 = vpop.f32.mrb[2].mxu0 }
 0x10b   : > { %v2136_v42 = vadd.f32 %v2135_v9, %v2134_v37  ;;  %v2137_v43 = vpop.f32.mrb[2].mxu1  ;;  %v2074_v24 = vpop.f32.mrb[3].mxu0 }
 0x10c   : > { %v2075_v44 = vadd.f32 %v2074_v24, %v2073_v41  ;;  %v2138_v45 = vpop.f32.mrb[3].mxu1 }
 0x10d   : > { %v3134_v46 = vadd.f32 %v2136_v42, %v2072_v40  ;;  %v2139_v39 = vadd.f32 %v2138_v45, %v2137_v43 }
 0x10f   : > { %v3136_v47 = vadd.f32 %v2139_v39, %v2075_v44 }
 0x110   : > { %v2076_v48 = vpop.f32.mrb[4].mxu0 }
 0x111   : > { %v2140_v49 = vpop.f32.mrb[4].mxu1  ;;  %v2077_v52 = vpop.f32.mrb[5].mxu0 }
 0x112   : > { %v2078_v53 = vadd.f32 %v2077_v52, %v2076_v48  ;;  %v2141_v54 = vpop.f32.mrb[5].mxu1  ;;  %v2079_v55 = vpop.f32.mrb[6].mxu0 }
 0x113   : > { %v2142_v56 = vadd.f32 %v2141_v54, %v2140_v49  ;;  %v2143_v58 = vpop.f32.mrb[6].mxu1  ;;  %v2080_v59 = vpop.f32.mrb[7].mxu0 }
 0x114   : > { %v2081_v60 = vadd.f32 %v2080_v59, %v2079_v55  ;;  %v2144_v63 = vpop.f32.mrb[7].mxu1 }
 0x115   : > { %v3138_v0 = vadd.f32 %v2142_v56, %v2078_v53  ;;  %v2145_v1 = vadd.f32 %v2144_v63, %v2143_v58 }
 0x117   : > { %v3140_v2 = vadd.f32 %v2145_v1, %v2081_v60 }
 0x118   : > { %v2082_v3 = vpop.f32.mrb[8].mxu0 }
 0x119   : > { %v2146_v4 = vpop.f32.mrb[8].mxu1  ;;  %v2083_v5 = vpop.f32.mrb[9].mxu0 }
 0x11a   : > { %v2084_v6 = vadd.f32 %v2083_v5, %v2082_v3  ;;  %v2147_v7 = vpop.f32.mrb[9].mxu1  ;;  %v2085_v8 = vpop.f32.mrb[10].mxu0 }
 0x11b   : > { %v2148_v11 = vadd.f32 %v2147_v7, %v2146_v4  ;;  %v2149_v13 = vpop.f32.mrb[10].mxu1  ;;  %v2086_v14 = vpop.f32.mrb[11].mxu0 }
 0x11c   : > { %v2087_v15 = vadd.f32 %v2086_v14, %v2085_v8  ;;  %v2150_v16 = vpop.f32.mrb[11].mxu1 }
 0x11d   : > { %v3142_v17 = vadd.f32 %v2148_v11, %v2084_v6  ;;  %v2151_v18 = vadd.f32 %v2150_v16, %v2149_v13 }
 0x11f   : > { %v3144_v19 = vadd.f32 %v2151_v18, %v2087_v15 }
 0x120   : > { %v2088_v20 = vpop.f32.mrb[12].mxu0 }
 0x121   : > { %v2152_v21 = vpop.f32.mrb[12].mxu1  ;;  %v2089_v50 = vpop.f32.mrb[13].mxu0 }
 0x122   : > { %v2090_v51 = vadd.f32 %v2089_v50, %v2088_v20  ;;  %v2153_v57 = vpop.f32.mrb[13].mxu1  ;;  %v2091_v61 = vpop.f32.mrb[14].mxu0 }
 0x123   : > { %v2154_v62 = vadd.f32 %v2153_v57, %v2152_v21  ;;  %v2155_v10 = vpop.f32.mrb[14].mxu1  ;;  %v2092_v12 = vpop.f32.mrb[15].mxu0 }
 0x124   : > { %v2093_v22 = vadd.f32 %v2092_v12, %v2091_v61  ;;  %v2156_v23 = vpop.f32.mrb[15].mxu1 }
 0x125   : > { %v3146_v25 = vadd.f32 %v2154_v62, %v2090_v51  ;;  %v2157_v26 = vadd.f32 %v2156_v23, %v2155_v10 }
 0x127   : > { %v3148_v27 = vadd.f32 %v2157_v26, %v2093_v22 }
 0x128   : > { %v2094_v28 = vpop.f32.mrb[16].mxu0 }
 0x129   : > { %v2158_v29 = vpop.f32.mrb[16].mxu1  ;;  %v2095_v30 = vpop.f32.mrb[17].mxu0 }
 0x12a   : > { %v2096_v31 = vadd.f32 %v2095_v30, %v2094_v28  ;;  %v2159_v32 = vpop.f32.mrb[17].mxu1  ;;  %v2097_v33 = vpop.f32.mrb[18].mxu0 }
 0x12b   : > { %v2160_v34 = vadd.f32 %v2159_v32, %v2158_v29  ;;  %v2161_v35 = vpop.f32.mrb[18].mxu1  ;;  %v2098_v36 = vpop.f32.mrb[19].mxu0 }
 0x12c   : > { %v2099_v37 = vadd.f32 %v2098_v36, %v2097_v33  ;;  %v2162_v38 = vpop.f32.mrb[19].mxu1 }
 0x12d   : > { %v3150_v40 = vadd.f32 %v2160_v34, %v2096_v31  ;;  %v2163_v9 = vadd.f32 %v2162_v38, %v2161_v35 }
 0x12f   : > { %v3152_v41 = vadd.f32 %v2163_v9, %v2099_v37 }
 0x130   : > { %v2100_v42 = vpop.f32.mrb[20].mxu0 }
 0x131   : > { %v2164_v43 = vpop.f32.mrb[20].mxu1  ;;  %v2101_v24 = vpop.f32.mrb[21].mxu0 }
 0x132   : > { %v2102_v44 = vadd.f32 %v2101_v24, %v2100_v42  ;;  %v2165_v45 = vpop.f32.mrb[21].mxu1  ;;  %v2103_v39 = vpop.f32.mrb[22].mxu0 }
 0x133   : > { %v2166_v48 = vadd.f32 %v2165_v45, %v2164_v43  ;;  %v2167_v49 = vpop.f32.mrb[22].mxu1  ;;  %v2104_v52 = vpop.f32.mrb[23].mxu0 }
 0x134   : > { %v2105_v53 = vadd.f32 %v2104_v52, %v2103_v39  ;;  %v2168_v54 = vpop.f32.mrb[23].mxu1 }
 0x135   : > { %v3154_v55 = vadd.f32 %v2166_v48, %v2102_v44  ;;  %v2169_v56 = vadd.f32 %v2168_v54, %v2167_v49 }
 0x137   : > { %v3156_v58 = vadd.f32 %v2169_v56, %v2105_v53 }
 0x138   : > { %v2106_v59 = vpop.f32.mrb[24].mxu0 }
 0x139   : > { %v2170_v60 = vpop.f32.mrb[24].mxu1  ;;  %v2107_v63 = vpop.f32.mrb[25].mxu0 }
 0x13a   : > { %v2108_v1 = vadd.f32 %v2107_v63, %v2106_v59  ;;  %v2171_v3 = vpop.f32.mrb[25].mxu1  ;;  %v2109_v4 = vpop.f32.mrb[26].mxu0 }
 0x13b   : > { %v2172_v5 = vadd.f32 %v2171_v3, %v2170_v60  ;;  %v2173_v6 = vpop.f32.mrb[26].mxu1  ;;  %v2110_v7 = vpop.f32.mrb[27].mxu0 }
 0x13c   : > { %v2111_v8 = vadd.f32 %v2110_v7, %v2109_v4  ;;  %v2174_v11 = vpop.f32.mrb[27].mxu1 }
 0x13d   : > { %v3158_v13 = vadd.f32 %v2172_v5, %v2108_v1  ;;  %v2175_v14 = vadd.f32 %v2174_v11, %v2173_v6 }
 0x13f   : > { %v3160_v15 = vadd.f32 %v2175_v14, %v2111_v8 }
 0x140   : > { %v2112_v16 = vpop.f32.mrb[28].mxu0 }
 0x141   : > { %v2176_v18 = vpop.f32.mrb[28].mxu1  ;;  %v2113_v20 = vpop.f32.mrb[29].mxu0 }
 0x142   : > { %v2114_v21 = vadd.f32 %v2113_v20, %v2112_v16  ;;  %v2177_v50 = vpop.f32.mrb[29].mxu1  ;;  %v2115_v51 = vpop.f32.mrb[30].mxu0 }
 0x143   : > { %v2178_v57 = vadd.f32 %v2177_v50, %v2176_v18  ;;  %v2179_v61 = vpop.f32.mrb[30].mxu1  ;;  %v2116_v62 = vpop.f32.mrb[31].mxu0 }
 0x144   : > { %v2117_v10 = vadd.f32 %v2116_v62, %v2115_v51  ;;  %v2180_v12 = vpop.f32.mrb[31].mxu1 }
 0x145   : > { %v3162_v22 = vadd.f32 %v2178_v57, %v2114_v21  ;;  %v2181_v23 = vadd.f32 %v2180_v12, %v2179_v61 }
 0x147   : > { %v3164_v26 = vadd.f32 %v2181_v23, %v2117_v10 }
 0x148   : > { %v2198_v28 = vpop.f32.mrb[32].mxu0 }
 0x149   : > { %v2199_v29 = vpop.f32.mrb[33].mxu0  ;;  %v2262_v30 = vpop.f32.mrb[32].mxu1 }
 0x14a   : > { %v2200_v31 = vadd.f32 %v2199_v29, %v2198_v28  ;;  %v2201_v32 = vpop.f32.mrb[34].mxu0  ;;  %v2263_v33 = vpop.f32.mrb[33].mxu1 }
 0x14b   : > { %v2202_v34 = vpop.f32.mrb[35].mxu0  ;;  %v2264_v35 = vadd.f32 %v2263_v33, %v2262_v30  ;;  %v2265_v36 = vpop.f32.mrb[34].mxu1 }
 0x14c   : > { %v1372_v37 = vadd.f32 %v2200_v31, %v3134_v46  ;;  %v2203_v38 = vadd.f32 %v2202_v34, %v2201_v32  ;;  %v2266_v9 = vpop.f32.mrb[35].mxu1 }
 0x14d   : > { %v2267_v42 = vadd.f32 %v2266_v9, %v2265_v36 }
 0x14e   : > { %v1375_v43 = vadd.f32 %v2203_v38, %v3136_v47  ;;  %v3168_v24 = vadd.f32 %v2264_v35, %v1372_v37 }
 0x150   : > { %v2204_v44 = vpop.f32.mrb[36].mxu0  ;;  %v3170_v45 = vadd.f32 %v2267_v42, %v1375_v43 }
 0x151   : > { %v2205_v39 = vpop.f32.mrb[37].mxu0  ;;  %v2268_v48 = vpop.f32.mrb[36].mxu1 }
 0x152   : > { %v2206_v49 = vadd.f32 %v2205_v39, %v2204_v44  ;;  %v2207_v52 = vpop.f32.mrb[38].mxu0  ;;  %v2269_v53 = vpop.f32.mrb[37].mxu1 }
 0x153   : > { %v2208_v54 = vpop.f32.mrb[39].mxu0  ;;  %v2270_v56 = vadd.f32 %v2269_v53, %v2268_v48  ;;  %v2271_v59 = vpop.f32.mrb[38].mxu1 }
 0x154   : > { %v1380_v46 = vadd.f32 %v2206_v49, %v3138_v0  ;;  %v2209_v60 = vadd.f32 %v2208_v54, %v2207_v52  ;;  %v2272_v63 = vpop.f32.mrb[39].mxu1 }
 0x155   : > { %v2273_v1 = vadd.f32 %v2272_v63, %v2271_v59 }
 0x156   : > { %v1383_v47 = vadd.f32 %v2209_v60, %v3140_v2  ;;  %v3174_v3 = vadd.f32 %v2270_v56, %v1380_v46 }
 0x158   : > { %v2210_v4 = vpop.f32.mrb[40].mxu0  ;;  %v3176_v5 = vadd.f32 %v2273_v1, %v1383_v47 }
 0x159   : > { %v2211_v6 = vpop.f32.mrb[41].mxu0  ;;  %v2274_v7 = vpop.f32.mrb[40].mxu1 }
 0x15a   : > { %v2212_v8 = vadd.f32 %v2211_v6, %v2210_v4  ;;  %v2213_v11 = vpop.f32.mrb[42].mxu0  ;;  %v2275_v14 = vpop.f32.mrb[41].mxu1 }
 0x15b   : > { %v2214_v16 = vpop.f32.mrb[43].mxu0  ;;  %v2276_v18 = vadd.f32 %v2275_v14, %v2274_v7  ;;  %v2277_v20 = vpop.f32.mrb[42].mxu1 }
 0x15c   : > { %v1388_v0 = vadd.f32 %v2212_v8, %v3142_v17  ;;  %v2215_v21 = vadd.f32 %v2214_v16, %v2213_v11  ;;  %v2278_v50 = vpop.f32.mrb[43].mxu1 }
 0x15d   : > { %v2279_v51 = vadd.f32 %v2278_v50, %v2277_v20 }
 0x15e   : > { %v1391_v2 = vadd.f32 %v2215_v21, %v3144_v19  ;;  %v3180_v57 = vadd.f32 %v2276_v18, %v1388_v0 }
 0x160   : > { %v2216_v61 = vpop.f32.mrb[44].mxu0  ;;  %v3182_v62 = vadd.f32 %v2279_v51, %v1391_v2 }
 0x161   : > { %v2217_v10 = vpop.f32.mrb[45].mxu0  ;;  %v2280_v12 = vpop.f32.mrb[44].mxu1 }
 0x162   : > { %v2218_v23 = vadd.f32 %v2217_v10, %v2216_v61  ;;  %v2219_v28 = vpop.f32.mrb[46].mxu0  ;;  %v2281_v29 = vpop.f32.mrb[45].mxu1 }
 0x163   : > { %v2220_v30 = vpop.f32.mrb[47].mxu0  ;;  %v2282_v31 = vadd.f32 %v2281_v29, %v2280_v12  ;;  %v2283_v32 = vpop.f32.mrb[46].mxu1 }
 0x164   : > { %v1396_v17 = vadd.f32 %v2218_v23, %v3146_v25  ;;  %v2221_v33 = vadd.f32 %v2220_v30, %v2219_v28  ;;  %v2284_v34 = vpop.f32.mrb[47].mxu1 }
 0x165   : > { %v2285_v35 = vadd.f32 %v2284_v34, %v2283_v32 }
 0x166   : > { %v1399_v19 = vadd.f32 %v2221_v33, %v3148_v27  ;;  %v3186_v36 = vadd.f32 %v2282_v31, %v1396_v17 }
 0x168   : > { %v2222_v37 = vpop.f32.mrb[48].mxu0  ;;  %v3188_v38 = vadd.f32 %v2285_v35, %v1399_v19 }
 0x169   : > { %v2223_v9 = vpop.f32.mrb[49].mxu0  ;;  %v2286_v42 = vpop.f32.mrb[48].mxu1 }
 0x16a   : > { %v2224_v43 = vadd.f32 %v2223_v9, %v2222_v37  ;;  %v2225_v44 = vpop.f32.mrb[50].mxu0  ;;  %v2287_v39 = vpop.f32.mrb[49].mxu1 }
 0x16b   : > { %v2226_v48 = vpop.f32.mrb[51].mxu0  ;;  %v2288_v49 = vadd.f32 %v2287_v39, %v2286_v42  ;;  %v2289_v52 = vpop.f32.mrb[50].mxu1 }
 0x16c   : > { %v1404_v25 = vadd.f32 %v2224_v43, %v3150_v40  ;;  %v2227_v53 = vadd.f32 %v2226_v48, %v2225_v44  ;;  %v2290_v54 = vpop.f32.mrb[51].mxu1 }
 0x16d   : > { %v2291_v56 = vadd.f32 %v2290_v54, %v2289_v52 }
 0x16e   : > { %v1407_v27 = vadd.f32 %v2227_v53, %v3152_v41  ;;  %v1501_v59 = vadd.f32 %v2288_v49, %v1404_v25 }
 0x170   : > { %v2228_v46 = vpop.f32.mrb[52].mxu0  ;;  %v3192_v60 = vadd.f32 %v2291_v56, %v1407_v27 }
 0x171   : > { %v2229_v63 = vpop.f32.mrb[53].mxu0  ;;  %v2292_v1 = vpop.f32.mrb[52].mxu1 }
 0x172   : > { %v2230_v47 = vadd.f32 %v2229_v63, %v2228_v46  ;;  %v2231_v4 = vpop.f32.mrb[54].mxu0  ;;  %v2293_v6 = vpop.f32.mrb[53].mxu1 }
 0x173   : > { %v2232_v7 = vpop.f32.mrb[55].mxu0  ;;  %v2294_v8 = vadd.f32 %v2293_v6, %v2292_v1  ;;  %v2295_v11 = vpop.f32.mrb[54].mxu1 }
 0x174   : > { %v1412_v14 = vadd.f32 %v2230_v47, %v3154_v55  ;;  %v2233_v40 = vadd.f32 %v2232_v7, %v2231_v4  ;;  %v2296_v16 = vpop.f32.mrb[55].mxu1 }
 0x175   : > { %v2297_v18 = vadd.f32 %v2296_v16, %v2295_v11 }
 0x176   : > { %v1415_v20 = vadd.f32 %v2233_v40, %v3156_v58  ;;  %v1509_v41 = vadd.f32 %v2294_v8, %v1412_v14 }
 0x178   : > { %v2234_v0 = vpop.f32.mrb[56].mxu0  ;;  %v1512_v21 = vadd.f32 %v2297_v18, %v1415_v20 }
 0x179   : > { %v2235_v50 = vpop.f32.mrb[57].mxu0  ;;  %v2298_v51 = vpop.f32.mrb[56].mxu1 }
 0x17a   : > { %v2236_v2 = vadd.f32 %v2235_v50, %v2234_v0  ;;  %v2237_v61 = vpop.f32.mrb[58].mxu0  ;;  %v2299_v10 = vpop.f32.mrb[57].mxu1 }
 0x17b   : > { %v2238_v12 = vpop.f32.mrb[59].mxu0  ;;  %v2300_v23 = vadd.f32 %v2299_v10, %v2298_v51  ;;  %v2301_v28 = vpop.f32.mrb[58].mxu1 }
 0x17c   : > { %v1420_v29 = vadd.f32 %v2236_v2, %v3158_v13  ;;  %v2239_v55 = vadd.f32 %v2238_v12, %v2237_v61  ;;  %v2302_v30 = vpop.f32.mrb[59].mxu1 }
 0x17d   : > { %v2303_v31 = vadd.f32 %v2302_v30, %v2301_v28 }
 0x17e   : > { %v1423_v32 = vadd.f32 %v2239_v55, %v3160_v15  ;;  %v3198_v58 = vadd.f32 %v2300_v23, %v1420_v29 }
 0x180   : > { %v2240_v17 = vpop.f32.mrb[60].mxu0  ;;  %v3200_v33 = vadd.f32 %v2303_v31, %v1423_v32 }
 0x181   : > { %v2241_v34 = vpop.f32.mrb[61].mxu0  ;;  %v2304_v35 = vpop.f32.mrb[60].mxu1 }
 0x182   : > { %v2242_v19 = vadd.f32 %v2241_v34, %v2240_v17  ;;  %v2243_v37 = vpop.f32.mrb[62].mxu0  ;;  %v2305_v9 = vpop.f32.mrb[61].mxu1 }
 0x183   : > { %v2244_v42 = vpop.f32.mrb[63].mxu0  ;;  %v2306_v13 = vadd.f32 %v2305_v9, %v2304_v35  ;;  %v2307_v43 = vpop.f32.mrb[62].mxu1 }
 0x184   : > { %v1428_v44 = vadd.f32 %v2242_v19, %v3162_v22  ;;  %v2245_v39 = vadd.f32 %v2244_v42, %v2243_v37  ;;  %v2308_v15 = vpop.f32.mrb[63].mxu1 }
 0x185   : > { %v2309_v48 = vadd.f32 %v2308_v15, %v2307_v43 }
 0x186   : > { %v1431_v49 = vadd.f32 %v2245_v39, %v3164_v26  ;;  %v1525_v52 = vadd.f32 %v2306_v13, %v1428_v44 }
 0x188   : > { %v2344_v25 = vpop.f32.mrb[64].mxu0  ;;  %v1528_v53 = vadd.f32 %v2309_v48, %v1431_v49 }
 0x189   : > { %v1574_v54 = vadd.f32 %v2344_v25, %v3174_v3  ;;  %v2352_v56 = vpop.f32.mrb[64].mxu1  ;;  %v1565_v27 = vpop.f32.mrb[65].mxu0 }
 0x18a   : > { %v3209_v46 = vadd.f32 %v2352_v56, %v1509_v41  ;;  %v1566_v63 = vadd.f32 %v1565_v27, %v3168_v24  ;;  %v1597_v22 = vpop.f32.mrb[65].mxu1  ;;  %v2345_v1 = vpop.f32.mrb[66].mxu0 }
 0x18b   : > { %1630 = vst [vmem:[%s3212_s8 + $0x10] sm:$0xff] %v1574_v54  ;;  %v3215_v26 = vadd.f32 %v1597_v22, %v1501_v59  ;;  %v1577_v3 = vadd.f32 %v2345_v1, %v3176_v5  ;;  %v2353_v47 = vpop.f32.mrb[66].mxu1  ;;  %v1568_v4 = vpop.f32.mrb[67].mxu0 }
 0x18c   : > { %1638 = vst [vmem:[%s3212_s8 + $0x50] sm:$0xff] %v3209_v46  ;;  %1628 = vst [vmem:[%s3212_s8] sm:$0xff] %v1566_v63  ;;  %v3221_v24 = vadd.f32 %v2353_v47, %v1512_v21  ;;  %v1569_v6 = vadd.f32 %v1568_v4, %v3170_v45  ;;  %v1600_v7 = vpop.f32.mrb[67].mxu1  ;;  %v1665_v5 = vmul.f32 %v1566_v63, %v1566_v63 }
 0x18d   : > { %1636 = vst [vmem:[%s3212_s8 + $0x40] sm:$0xff] %v3215_v26  ;;  %1631 = vst [vmem:[%s3212_s8 + $0x18] sm:$0xff] %v1577_v3  ;;  %v3230_v59 = vadd.f32 %v1600_v7, %v3192_v60  ;;  %v1667_v45 = vmul.f32 %v1574_v54, %v1574_v54  ;;  %v1668_v18 = vmul.f32 %v1577_v3, %v1577_v3 }
 0x18e   : > { %1639 = vst [vmem:[%s3212_s8 + $0x58] sm:$0xff] %v3221_v24  ;;  %1629 = vst [vmem:[%s3212_s8 + $0x8] sm:$0xff] %v1569_v6  ;;  %v1644_v8 = vadd.f32 %v1569_v6, %v1566_v63  ;;  %v1666_v11 = vmul.f32 %v1569_v6, %v1569_v6 }
 0x18f   : > { %1637 = vst [vmem:[%s3212_s8 + $0x48] sm:$0xff] %v3230_v59 }
 0x190   : > { %v1645_v14 = vadd.f32 %v1644_v8, %v1574_v54  ;;  %v1681_v40 = vadd.f32 %v1666_v11, %v1665_v5  ;;  %v2348_v16 = vpop.f32.mrb[68].mxu0 }
 0x191   : > { %v1590_v60 = vadd.f32 %v2348_v16, %v3186_v36  ;;  %v2356_v20 = vpop.f32.mrb[68].mxu1  ;;  %v1581_v41 = vpop.f32.mrb[69].mxu0 }
 0x192   : > { %v1682_v0 = vadd.f32 %v1681_v40, %v1667_v45  ;;  %v3240_v21 = vadd.f32 %v2356_v20, %v1525_v52  ;;  %v1582_v50 = vadd.f32 %v1581_v41, %v3180_v57  ;;  %v1646_v51 = vadd.f32 %v1645_v14, %v1577_v3  ;;  %v1613_v2 = vpop.f32.mrb[69].mxu1  ;;  %v2349_v61 = vpop.f32.mrb[70].mxu0 }
 0x193   : > { %1634 = vst [vmem:[%s3212_s8 + $0x30] sm:$0xff] %v1590_v60  ;;  %v3247_v10 = vadd.f32 %v1613_v2, %v3198_v58  ;;  %v1593_v36 = vadd.f32 %v2349_v61, %v3188_v38  ;;  %v2357_v12 = vpop.f32.mrb[70].mxu1  ;;  %v1584_v23 = vpop.f32.mrb[71].mxu0 }
 0x194   : > { %1642 = vst [vmem:[%s3212_s8 + $0x70] sm:$0xff] %v3240_v21  ;;  %1632 = vst [vmem:[%s3212_s8 + $0x20] sm:$0xff] %v1582_v50  ;;  %v1647_v57 = vadd.f32 %v1646_v51, %v1582_v50  ;;  %v1669_v28 = vmul.f32 %v1582_v50, %v1582_v50  ;;  %v1683_v29 = vadd.f32 %v1682_v0, %v1668_v18  ;;  %v1616_v55 = vpop.f32.mrb[71].mxu1 }
 0x195   : > { %1640 = vst [vmem:[%s3212_s8 + $0x60] sm:$0xff] %v3247_v10  ;;  %1635 = vst [vmem:[%s3212_s8 + $0x38] sm:$0xff] %v1593_v36  ;;  %v3256_v30 = vadd.f32 %v2357_v12, %v1528_v53  ;;  %v1585_v38 = vadd.f32 %v1584_v23, %v3182_v62  ;;  %v1617_v32 = vadd.f32 %v1616_v55, %v3200_v33 }
 0x196   : > { %v1684_v31 = vadd.f32 %v1683_v29, %v1669_v28  ;;  %v1671_v62 = vmul.f32 %v1590_v60, %v1590_v60 }
 0x197   : > { %1643 = vst [vmem:[%s3212_s8 + $0x78] sm:$0xff] %v3256_v30  ;;  %1633 = vst [vmem:[%s3212_s8 + $0x28] sm:$0xff] %v1585_v38  ;;  %v1648_v58 = vadd.f32 %v1647_v57, %v1585_v38  ;;  %v1670_v17 = vmul.f32 %v1585_v38, %v1585_v38 }
 0x198   : > { %1641 = vst [vmem:[%s3212_s8 + $0x68] sm:$0xff] %v1617_v32 }
 0x199   : > { %v1649_v34 = vadd.f32 %v1648_v58, %v1590_v60  ;;  %v1685_v35 = vadd.f32 %v1684_v31, %v1670_v17 }
 0x19a   : > { %2538 = shalt.err (!%p2535_p6)
}
 0x19b   : > { %s2539_s8 = scalar_lea.hbm %s3262_s5, 2048  ;;  %s2543_s21 = scalar_lea.hbm %s3378_s2, 8192 }
 0x19c   : > { %p2540_p7 = scmp.ne.s32.totalorder %s3262_s5, %s2539_s8  ;;  %p2544_p11 = scmp.lt.u32.totalorder %s3262_s5, %s3378_s2 }
 0x19d   : > { %p2545_p12 = scmp.lt.u32.totalorder %s2543_s21, %s2539_s8  ;;  %p2547_p0 = scmp.lt.u32.totalorder %s2539_s8, %s3262_s5 }
 0x19e   : > { %p2541_p9 = pnand %p2540_p7, %p2728_p3 }
 0x19f   : > { %p2546_p13 = por %p2545_p12, %p2544_p11 }
 0x1a0   : > { %p2542_p10 = pneg %p2541_p9 }
 0x1a1   : > { %p2548_p1 = por %p2547_p0, %p2546_p13 }
 0x1a3   : > { %p2549_p2 = pnand %p2548_p1, %p2542_p10 }
 0x1a5   : > { %2552 = shalt.err (!%p2549_p2)
}
 0x1a6   : > { %s2654_s29 = smov 128   ;;  %s2655_s6 = smov 8   ;;  %v1672_v33 = vmul.f32 %v1593_v36, %v1593_v36  ;;  %v1650_v19 = vadd.f32 %v1649_v34, %v1593_v36  ;;  %v1686_v37 = vadd.f32 %v1685_v35, %v1671_v62  ;;  %v1673_v9 = vmul.f32 %v3215_v26, %v3215_v26 }
 0x1a7   : > { %2375 = dma.vmem_to_hbm [thread:$0]  (%p2728_p3), %s3264_s27, 2048, %s3262_s5, %s1705_s24, %s2654_s29, %s2654_s29, %s2655_s6   ;;  %v1674_v43 = vmul.f32 %v3230_v59, %v3230_v59  ;;  %v1675_v15 = vmul.f32 %v3209_v46, %v3209_v46  ;;  %v1676_v52 = vmul.f32 %v3221_v24, %v3221_v24  ;;  %v1677_v54 = vmul.f32 %v3247_v10, %v3247_v10 }
 0x1a8   : > { %v1651_v42 = vadd.f32 %v1650_v19, %v3215_v26  ;;  %v1687_v13 = vadd.f32 %v1686_v37, %v1672_v33  ;;  %v1678_v22 = vmul.f32 %v1617_v32, %v1617_v32  ;;  %v1680_v47 = vmul.f32 %v3256_v30, %v3256_v30  ;;  %s1867_s27 = sshll.u32 %s3203_s28, 1  ;;  %s2049_s5 = sshll.u32 %s2639_s16, 1 }
 0x1a9   : > { %s1740_s24 = sadd.s32 %s2635_s15, %s2049_s5  ;;  %s190_s10 = scalar_lea.vmem [#allocation5], %s1867_s27 }
 0x1aa   : > { %v1688_v44 = vadd.f32 %v1687_v13, %v1673_v9  ;;  %v1652_v39 = vadd.f32 %v1651_v42, %v3230_v59  ;;  %s2050_s7 = sshll.u32 %s1740_s24, 5  ;;  %s1744_s8 = sshll.u32 %s190_s10, 4  ;;  %s3324_s8 = int_to_ptr.vmem [resolvable:$true] %s1744_s8 }
 0x1ab   : > { %s3322_s16 = scalar_lea.hbm %s3379_s3, %s2050_s7  ;;  %s1710_s15 = scalar_lea.sflag [#allocation6], %s3203_s28 }
 0x1ac   : > { %v1653_v48 = vadd.f32 %v1652_v39, %v3209_v46  ;;  %v1689_v49 = vadd.f32 %v1688_v44, %v1674_v43  ;;  %v1679_v46 = vmul.f32 %v3240_v21, %v3240_v21  ;;  %s2553_s21 = scalar_lea.vmem %s3324_s8, 32  ;;  %s2656_s9 = smov [#allocation5]  }
 0x1ad   : > { %p2554_p4 = scmp.ne.s32.totalorder %s3324_s8, %s2553_s21  ;;  %s2557_s4 = sshll.u32 %s2656_s9, 4  ;;  %s2558_s4 = int_to_ptr.vmem [resolvable:$false] %s2557_s4 }
 0x1ae   : > { %v1654_v25 = vadd.f32 %v1653_v48, %v3221_v24  ;;  %v1690_v53 = vadd.f32 %v1689_v49, %v1675_v15  ;;  %s2559_s29 = scalar_lea.vmem %s2558_s4, 64  ;;  %p2560_p7 = scmp.lt.s32.totalorder %s3324_s8, %s2558_s4 }
 0x1af   : > { %p2555_p5 = pnand %p2554_p4, %p2728_p3  ;;  %p2561_p9 = scmp.lt.s32.totalorder %s2559_s29, %s2553_s21 }
 0x1b0   : > { %v1655_v56 = vadd.f32 %v1654_v25, %v3247_v10  ;;  %v1691_v27 = vadd.f32 %v1690_v53, %v1676_v52 }
 0x1b1   : > { %p2556_p6 = pneg %p2555_p5  ;;  %p2562_p10 = por %p2561_p9, %p2560_p7 }
 0x1b2   : > { %v1656_v63 = vadd.f32 %v1655_v56, %v1617_v32  ;;  %v1692_v1 = vadd.f32 %v1691_v27, %v1677_v54 }
 0x1b3   : > { %p2563_p11 = pnand %p2562_p10, %p2556_p6 }
 0x1b4   : > { %v1657_v26 = vadd.f32 %v1656_v63, %v3240_v21  ;;  %v1693_v3 = vadd.f32 %v1692_v1, %v1678_v22 }
 0x1b6   : > { %v1658_v4 = vadd.f32 %v1657_v26, %v3256_v30  ;;  %v1694_v24 = vadd.f32 %v1693_v3, %v1679_v46 }
 0x1b8   : > { %v1659_v6 = vrot.slane %v1658_v4, 4  ;;  %v1695_v7 = vadd.f32 %v1694_v24, %v1680_v47 }
 0x1ba   : > { %v1660_v59 = vadd.f32 %v1659_v6, %v1658_v4  ;;  %v1696_v5 = vrot.slane %v1695_v7, 4 }
 0x1bc   : > { %v1661_v8 = vrot.slane %v1660_v59, 2  ;;  %v1697_v11 = vadd.f32 %v1696_v5, %v1695_v7 }
 0x1be   : > { %v1662_v45 = vadd.f32 %v1661_v8, %v1660_v59  ;;  %v1698_v14 = vrot.slane %v1697_v11, 2 }
 0x1c0   : > { %v1663_v40 = vrot.slane %v1662_v45, 1  ;;  %v1699_v16 = vadd.f32 %v1698_v14, %v1697_v11 }
 0x1c2   : > { %v1664_v18 = vadd.f32 %v1663_v40, %v1662_v45  ;;  %v1700_v60 = vrot.slane %v1699_v16, 1 }
 0x1c4   : > { %v1701_v20 = vadd.f32 %v1700_v60, %v1699_v16  ;;  %1702 = vst [vmem:[%s190_s10] sm:$0x1] %v1664_v18 }
 0x1c6   : > { %1703 = vst [vmem:[%s190_s10 + $0x1] sm:$0x1] %v1701_v20 }
 0x1c7   : > { %2566 = shalt.err (!%p2563_p11)
}
 0x1c8   : > { %s2567_s28 = scalar_lea.hbm %s3322_s16, 32  ;;  %s2571_s5 = scalar_lea.hbm %s3379_s3, 128 }
 0x1c9   : > { %p2568_p12 = scmp.ne.s32.totalorder %s3322_s16, %s2567_s28  ;;  %p2572_p1 = scmp.lt.u32.totalorder %s3322_s16, %s3379_s3 }
 0x1ca   : > { %p2573_p2 = scmp.lt.u32.totalorder %s2571_s5, %s2567_s28  ;;  %p2575_p5 = scmp.lt.u32.totalorder %s2567_s28, %s3322_s16 }
 0x1cb   : > { %p2569_p13 = pnand %p2568_p12, %p2728_p3 }
 0x1cc   : > { %p2574_p4 = por %p2573_p2, %p2572_p1 }
 0x1cd   : > { %p2570_p0 = pneg %p2569_p13 }
 0x1ce   : > { %p2576_p6 = por %p2575_p5, %p2574_p4 }
 0x1d0   : > { %p2577_p7 = pnand %p2576_p6, %p2570_p0 }
 0x1d2   : > { %2580 = shalt.err (!%p2577_p7)
}
 0x1d3   : > { %2376 = dma.vmem_to_hbm [thread:$0]  (%p2728_p3), %s3324_s8, 32, %s3322_s16, %s1710_s15  }
 0x1d4 PF: > { %p2386_p9 = scmp.ge.s32.totalorder %s2651_s19, 2  ;;  %s1756_s10 = sand.u32 1, %s2623_s12  }
 0x1d5   : > { %s1757_s11 = scalar_lea.sflag [#allocation4], %s1756_s10 }
 0x1d6   : > { %p2380_p10 = pnand %p2386_p9, %p2737_p8 }
 0x1d8   : > { %2614 = dma.done.wait (!%p2380_p10), %s1757_s11, 2048  }
 0x1d9   : > { %2616 = vsyncadd (!%p2380_p10), %s1757_s11, 4294965248  ;;  %s1766_s20 = scalar_lea.sflag [#allocation6], %s1756_s10 }
 0x1da   : > { %2618 = dma.done.wait (!%p2380_p10), %s1766_s20, 32  }
 0x1db   : > { %2620 = vsyncadd (!%p2380_p10), %s1766_s20, 4294967264  ;;  %s20_s19 = sadd.s32 1, %s2651_s19   ;;  %s3382_s12 = smov %s2627_s13 }
 0x1dc   : > { %p17_p11 = scmp.ge.s32.totalorder %s20_s19, 6   ;;  %s3383_s13 = smov %s2631_s14 }
 0x1dd   : > { %s3384_s14 = smov %s2746_s30  ;;  %s3385_s15 = smov %s2643_s17 }
 0x1de   : > { %s3386_s16 = smov %s2647_s18  ;;  %s3387_s17 = smov %s3390_s22 }
 0x1df   : > { %s3388_s18 = smov %s3394_s23  ;;  %19 = sbr.rel (!%p17_p11) target bundleno = 7 (0x7), region = 83 }
 0x1e6   :  { %1771 = vsyncpa [#allocation4], 1 }
 0x1e7   :  { %1773 = vsyncpa [#allocation4 + $0x1], 1 }
 0x1e8   :  { %1774 = vsyncpa [#allocation6], 1 }
 0x1e9   :  { %1776 = vsyncpa [#allocation6 + $0x1], 1 }

</bundles_post_ra>
